<compile_context>
chip_gen: v7x
topology: tpu7x:2x2x1
jax: 0.10.0
libtpu: 0.0.40
codegen_flags: <defaults>
</compile_context>

<pallas_src>
import functools
import math

import jax
import jax.numpy as jnp
from jax.experimental import pallas as pl
from jax.experimental.pallas import tpu as pltpu


def _vae_attn_kernel(x_ref, qT_ref, k_ref, vT_ref, wo_ref, bo_ref,
                     o_ref,
                     m_sc, l_sc, acc_sc):
    """Flash attention over pre-projected Q/K/V streams.

    Grid = (batch, q_tiles [parallel], kv_tiles [arbitrary, innermost]).

    x_ref   : (1, C, tq) f32   original x tile (residual), channel-major
    qT_ref  : (1, C, tq) bf16  projected queries, channel-major, 1/sqrt(C) folded
    k_ref   : (1, tk, C) bf16  projected keys, row-major
    vT_ref  : (1, C, tk) bf16  projected values, channel-major
    wo_ref  : (C, C)     bf16  out-projection weight (PyTorch (out, in) layout)
    bo_ref  : (C, 1)     f32   out-projection bias (column vector)
    o_ref   : (1, C, tq) f32   output tile, channel-major
    m_sc    : (1, tq)    f32   online-softmax running max (per query column)
    l_sc    : (1, tq)    f32   online-softmax running sum
    acc_sc  : (C, tq)    f32   unnormalized output accumulator, channel-major
    """
    ki = pl.program_id(2)

    @pl.when(ki == 0)
    def _init():
        m_sc[...] = jnp.full(m_sc.shape, -jnp.inf, dtype=jnp.float32)
        l_sc[...] = jnp.zeros(l_sc.shape, dtype=jnp.float32)
        acc_sc[...] = jnp.zeros(acc_sc.shape, dtype=jnp.float32)

    # Transposed scores: sT[k, q] = sum_c K[k, c] * qT[c, q]  -> plain MXU matmul.
    sT = jnp.dot(k_ref[0], qT_ref[0],
                 preferred_element_type=jnp.float32)                  # (tk, tq)

    m_prev = m_sc[...]                                                # (1, tq)
    m_new = jnp.maximum(m_prev, jnp.max(sT, axis=0, keepdims=True))
    alpha = jnp.exp(m_prev - m_new)                                   # (1, tq)
    p = jnp.exp(sT - m_new)                                           # (tk, tq) f32
    l_sc[...] = alpha * l_sc[...] + jnp.sum(p, axis=0, keepdims=True)
    # acc[c, q] += sum_k vT[c, k] * p[k, q]  -> plain MXU matmul, no relayout.
    acc_sc[...] = alpha * acc_sc[...] + jnp.dot(
        vT_ref[0], p.astype(jnp.bfloat16), preferred_element_type=jnp.float32)
    m_sc[...] = m_new

    @pl.when(ki == pl.num_programs(2) - 1)
    def _finalize():
        # Normalize the channel-major accumulator (EUP reciprocal), out-project
        # directly in (C, tq) layout, add bias + residual: no XLU transposes.
        attn = acc_sc[...] * pl.reciprocal(l_sc[...], approx=True)     # (C, tq)
        outT = jnp.dot(wo_ref[...], attn.astype(jnp.bfloat16),
                       preferred_element_type=jnp.float32) + bo_ref[...]
        o_ref[0] = (outT + x_ref[0]).astype(o_ref.dtype)


@functools.partial(jax.jit, static_argnames=("tq", "tk"))
def vae_attention_block(x_nchw, w_in, b_in, w_out, b_out, *, tq=512, tk=512):
    """x_nchw: (N, C, H, W) f32. Returns (N, C, H, W) f32.

    Defaults (tq = tk = 512) target production SD-VAE shapes (C=512, HW=4096);
    they are capped at HW for smaller inputs.  On v7x keep N * (HW // tq) >= 2
    so the two 'parallel' grid axes shard across both TensorCores.
    """
    n, c, h, w = x_nchw.shape
    hw = h * w
    assert c % 8 == 0, c
    tq = min(tq, hw)
    tk = min(tk, hw)
    assert hw % tq == 0 and hw % tk == 0, (hw, tq, tk)

    x_seq = x_nchw.reshape(n, c, hw)            # free reshape, no transpose

    scale = 1.0 / math.sqrt(c)
    # Split the fused in_proj; fold the softmax scale into the q projection.
    w_q = w_in[:c] * scale
    w_k = w_in[c:2 * c]
    w_v = w_in[2 * c:]
    b_q = b_in[:c] * scale
    b_k = b_in[c:2 * c]
    b_v = b_in[2 * c:]

    # Q/K/V projections hoisted out of the kernel: one-time XLA GEMMs.
    # The streams the kernel re-reads every kv step are bf16 in HBM.
    qT = (jnp.einsum("oc,nch->noh", w_q, x_seq)
          + b_q[None, :, None]).astype(jnp.bfloat16)        # (N, C, HW)
    vT = (jnp.einsum("oc,nch->noh", w_v, x_seq)
          + b_v[None, :, None]).astype(jnp.bfloat16)        # (N, C, HW)
    k_rows = (jnp.einsum("nch,oc->nho", x_seq, w_k)
              + b_k[None, None, :]).astype(jnp.bfloat16)    # (N, HW, C)

    w_o = w_out.astype(jnp.bfloat16)
    b_o = b_out.reshape(c, 1).astype(jnp.float32)

    grid = (n, hw // tq, hw // tk)

    # Explicit VMEM budget: double-buffered tiles + resident weight + scratch
    # + score temporaries, clamped to the chip's physical VMEM (v7x: 64 MiB).
    f32b, bf16b = 4, 2
    tile_bytes = (
        2 * c * tq * f32b           # residual x tile
        + 2 * c * tq * bf16b        # qT tile
        + 2 * tk * c * bf16b        # k tile
        + 2 * c * tk * bf16b        # vT tile
        + 2 * c * tq * f32b         # output tile
    )
    weight_bytes = 2 * (c * c * bf16b + c * 128 * f32b)     # w_o + lane-padded b_o
    scratch_bytes = c * tq * f32b + 2 * 8 * tq * f32b       # acc + padded m / l
    temp_bytes = 2 * tk * tq * f32b                         # live sT / p values
    working_set = tile_bytes + weight_bytes + scratch_bytes + temp_bytes
    try:
        phys_vmem = int(pltpu.get_tpu_info().vmem_capacity_bytes)
    except Exception:
        phys_vmem = 64 << 20                                # conservative (v7x)
    vmem_cap = min(phys_vmem - (8 << 20), 100 << 20)        # headroom for compiler
    vmem_limit = int(min(max(working_set + (16 << 20), 32 << 20), vmem_cap))

    out_seq = pl.pallas_call(
        _vae_attn_kernel,
        out_shape=jax.ShapeDtypeStruct((n, c, hw), x_seq.dtype),
        grid_spec=pltpu.PrefetchScalarGridSpec(
            num_scalar_prefetch=0,
            grid=grid,
            in_specs=[
                pl.BlockSpec((1, c, tq), lambda b, qi, ki: (b, 0, qi)),  # x residual
                pl.BlockSpec((1, c, tq), lambda b, qi, ki: (b, 0, qi)),  # qT
                pl.BlockSpec((1, tk, c), lambda b, qi, ki: (b, ki, 0)),  # K rows
                pl.BlockSpec((1, c, tk), lambda b, qi, ki: (b, 0, ki)),  # vT
                pl.BlockSpec((c, c),     lambda b, qi, ki: (0, 0)),      # w_out
                pl.BlockSpec((c, 1),     lambda b, qi, ki: (0, 0)),      # b_out
            ],
            out_specs=pl.BlockSpec((1, c, tq), lambda b, qi, ki: (b, 0, qi)),
            scratch_shapes=[
                pltpu.VMEM((1, tq), jnp.float32),   # running max
                pltpu.VMEM((1, tq), jnp.float32),   # running sum
                pltpu.VMEM((c, tq), jnp.float32),   # output accumulator (C-major)
            ],
        ),
        compiler_params=pltpu.CompilerParams(
            dimension_semantics=("parallel", "parallel", "arbitrary"),
            vmem_limit_bytes=vmem_limit,
        ),
    )(x_seq, qT, k_rows, vT, w_o, b_o)

    return out_seq.reshape(n, c, h, w)          # free reshape back to NCHW


def reference_forward(x_nchw, w_in, b_in, w_out, b_out):
    """Pure-JAX f32 reference mirroring the PyTorch forward exactly."""
    n, c, h, w = x_nchw.shape
    x = jnp.transpose(x_nchw.reshape(n, c, h * w), (0, 2, 1))     # (N, HW, C)
    qkv = x @ w_in.T + b_in
    q, k, v = jnp.split(qkv, 3, axis=-1)
    scores = (q @ jnp.swapaxes(k, -1, -2)) / math.sqrt(c)
    attn = jax.nn.softmax(scores, axis=-1)
    out = attn @ v
    out = out @ w_out.T + b_out
    out = out + x
    return jnp.transpose(out, (0, 2, 1)).reshape(n, c, h, w)


if __name__ == "__main__":
    # Small shapes consistent with the module: channels must be divisible by
    # 32 (GroupNorm(32, channels) in __init__); C=128 keeps all lane dims
    # full-width. Spatial 16x16 -> HW = 256 (tiles get capped to 256).
    N, C, H, W = 2, 128, 16, 16

    key = jax.random.PRNGKey(0)
    kx, kwi, kbi, kwo, kbo = jax.random.split(key, 5)

    x = jax.random.normal(kx, (N, C, H, W), dtype=jnp.float32)

    # PyTorch Linear default init: U(-1/sqrt(fan_in), 1/sqrt(fan_in))
    bound = 1.0 / math.sqrt(C)
    w_in = jax.random.uniform(kwi, (3 * C, C), jnp.float32, -bound, bound)
    b_in = jax.random.uniform(kbi, (3 * C,), jnp.float32, -bound, bound)
    w_out = jax.random.uniform(kwo, (C, C), jnp.float32, -bound, bound)
    b_out = jax.random.uniform(kbo, (C,), jnp.float32, -bound, bound)

    # GroupNorm params exist in the module but forward() never applies them.
    gn_weight = jnp.ones((C,), jnp.float32)   # unused by the reference forward
    gn_bias = jnp.zeros((C,), jnp.float32)    # unused by the reference forward

    out = jax.block_until_ready(vae_attention_block(x, w_in, b_in, w_out, b_out))
    ref = jax.block_until_ready(reference_forward(x, w_in, b_in, w_out, b_out))

    assert out.shape == (N, C, H, W)
    # bf16 MXU operands with f32 accumulation -> loose tolerance vs. the pure
    # f32 reference (observed error is ~1e-3; 3e-2 leaves margin).
    max_err = float(jnp.max(jnp.abs(out - ref)))
    assert max_err < 3e-2, max_err

    print("KERNEL_OK")
</pallas_src>

<mosaic_0001>
module attributes {stable_mosaic.version = 11 : i64} {
  func.func @_vae_attn_kernel(%arg0: i32, %arg1: i32, %arg2: i32, %arg3: memref<1x128x256xf32, #tpu.memory_space<vmem>>, %arg4: memref<1x128x256xbf16, #tpu.memory_space<vmem>>, %arg5: memref<1x256x128xbf16, #tpu.memory_space<vmem>>, %arg6: memref<1x128x256xbf16, #tpu.memory_space<vmem>>, %arg7: memref<128x128xbf16, #tpu.memory_space<vmem>>, %arg8: memref<128x1xf32, #tpu.memory_space<vmem>>, %arg9: memref<1x128x256xf32, #tpu.memory_space<vmem>>, %arg10: memref<1x256xf32, #tpu.memory_space<vmem>>, %arg11: memref<1x256xf32, #tpu.memory_space<vmem>>, %arg12: memref<128x256xf32, #tpu.memory_space<vmem>>) attributes {dimension_semantics = [#tpu.dimension_semantics<parallel>, #tpu.dimension_semantics<parallel>, #tpu.dimension_semantics<arbitrary>], iteration_bounds = array<i64: 2, 1, 1>, scalar_prefetch = 0 : i64, scratch_operands = 3 : i64, tpu.core_type = #tpu.core_type<tc>, window_params = [{transform_indices = @transform_0, window_bounds = array<i64: 1, 128, 256>}, {transform_indices = @transform_1, window_bounds = array<i64: 1, 128, 256>}, {transform_indices = @transform_2, window_bounds = array<i64: 1, 256, 128>}, {transform_indices = @transform_3, window_bounds = array<i64: 1, 128, 256>}, {pipeline_mode = #tpu.pipeline_mode<synchronous>, transform_indices = @transform_4, window_bounds = array<i64: 128, 128>}, {pipeline_mode = #tpu.pipeline_mode<synchronous>, transform_indices = @transform_5, window_bounds = array<i64: 128, 1>}, {transform_indices = @transform_6, window_bounds = array<i64: 1, 128, 256>}]} {
    %c0_i32 = arith.constant 0 : i32
    %0 = arith.cmpi eq, %arg2, %c0_i32 : i32
    %1 = arith.extui %0 : i1 to i32
    %c0_i32_0 = arith.constant 0 : i32
    %2 = arith.cmpi ne, %1, %c0_i32_0 : i32
    scf.if %2 {
      %cst_26 = arith.constant 0xFF800000 : f32
      %36 = vector.broadcast %cst_26 : f32 to vector<1x256xf32>
      %c0_27 = arith.constant 0 : index
      %c0_28 = arith.constant 0 : index
      %37 = vector.load %arg10[%c0_27, %c0_28] : memref<1x256xf32, #tpu.memory_space<vmem>>, vector<1x256xf32>
      tpu.vector_store %arg10[%c0_27, %c0_28], %36 {strides = array<i32>} : memref<1x256xf32, #tpu.memory_space<vmem>>, vector<1x256xf32>,
      %cst_29 = arith.constant 0.000000e+00 : f32
      %38 = vector.broadcast %cst_29 : f32 to vector<1x256xf32>
      %c0_30 = arith.constant 0 : index
      %c0_31 = arith.constant 0 : index
      %39 = vector.load %arg11[%c0_30, %c0_31] : memref<1x256xf32, #tpu.memory_space<vmem>>, vector<1x256xf32>
      tpu.vector_store %arg11[%c0_30, %c0_31], %38 {strides = array<i32>} : memref<1x256xf32, #tpu.memory_space<vmem>>, vector<1x256xf32>,
      %cst_32 = arith.constant 0.000000e+00 : f32
      %40 = vector.broadcast %cst_32 : f32 to vector<128x256xf32>
      %c0_33 = arith.constant 0 : index
      %c0_34 = arith.constant 0 : index
      %41 = vector.load %arg12[%c0_33, %c0_34] : memref<128x256xf32, #tpu.memory_space<vmem>>, vector<128x256xf32>
      tpu.vector_store %arg12[%c0_33, %c0_34], %40 {strides = array<i32>} : memref<128x256xf32, #tpu.memory_space<vmem>>, vector<128x256xf32>,
    } else {
    }
    %c0 = arith.constant 0 : index
    %c0_1 = arith.constant 0 : index
    %c0_2 = arith.constant 0 : index
    %3 = vector.load %arg5[%c0, %c0_1, %c0_2] : memref<1x256x128xbf16, #tpu.memory_space<vmem>>, vector<1x256x128xbf16>
    %4 = vector.shape_cast %3 : vector<1x256x128xbf16> to vector<256x128xbf16>
    %c0_3 = arith.constant 0 : index
    %c0_4 = arith.constant 0 : index
    %c0_5 = arith.constant 0 : index
    %5 = vector.load %arg4[%c0_3, %c0_4, %c0_5] : memref<1x128x256xbf16, #tpu.memory_space<vmem>>, vector<1x128x256xbf16>
    %6 = vector.shape_cast %5 : vector<1x128x256xbf16> to vector<128x256xbf16>
    %cst = arith.constant dense<0.000000e+00> : vector<256x256xf32>
    %7 = tpu.matmul %4, %6, %cst {dimension_numbers = #tpu.dot_dimension_numbers<[1], [0], [0], [1], [0, 0, 1, 1], [], []>} : vector<256x128xbf16>, vector<128x256xbf16>, vector<256x256xf32> -> vector<256x256xf32>
    %c0_6 = arith.constant 0 : index
    %c0_7 = arith.constant 0 : index
    %8 = vector.load %arg10[%c0_6, %c0_7] : memref<1x256xf32, #tpu.memory_space<vmem>>, vector<1x256xf32>
    %cst_8 = arith.constant dense<0xFF800000> : vector<256xf32>
    %9 = vector.multi_reduction <maximumf>, %7, %cst_8 [0] : vector<256x256xf32> to vector<256xf32>
    %10 = vector.shape_cast %9 : vector<256xf32> to vector<1x256xf32>
    %11 = arith.maximumf %8, %10 : vector<1x256xf32>
    %12 = arith.subf %8, %11 : vector<1x256xf32>
    %13 = math.exp %12 : vector<1x256xf32>
    %14 = vector.broadcast %11 : vector<1x256xf32> to vector<256x256xf32>
    %15 = arith.subf %7, %14 : vector<256x256xf32>
    %16 = math.exp %15 : vector<256x256xf32>
    %c0_9 = arith.constant 0 : index
    %c0_10 = arith.constant 0 : index
    %17 = vector.load %arg11[%c0_9, %c0_10] : memref<1x256xf32, #tpu.memory_space<vmem>>, vector<1x256xf32>
    %18 = arith.mulf %13, %17 : vector<1x256xf32>
    %cst_11 = arith.constant dense<0.000000e+00> : vector<256xf32>
    %19 = vector.multi_reduction <add>, %16, %cst_11 [0] : vector<256x256xf32> to vector<256xf32>
    %20 = vector.shape_cast %19 : vector<256xf32> to vector<1x256xf32>
    %21 = arith.addf %18, %20 : vector<1x256xf32>
    %c0_12 = arith.constant 0 : index
    %c0_13 = arith.constant 0 : index
    %22 = vector.load %arg11[%c0_12, %c0_13] : memref<1x256xf32, #tpu.memory_space<vmem>>, vector<1x256xf32>
    tpu.vector_store %arg11[%c0_12, %c0_13], %21 {strides = array<i32>} : memref<1x256xf32, #tpu.memory_space<vmem>>, vector<1x256xf32>,
    %c0_14 = arith.constant 0 : index
    %c0_15 = arith.constant 0 : index
    %23 = vector.load %arg12[%c0_14, %c0_15] : memref<128x256xf32, #tpu.memory_space<vmem>>, vector<128x256xf32>
    %24 = vector.broadcast %13 : vector<1x256xf32> to vector<128x256xf32>
    %25 = arith.mulf %24, %23 : vector<128x256xf32>
    %c0_16 = arith.constant 0 : index
    %c0_17 = arith.constant 0 : index
    %c0_18 = arith.constant 0 : index
    %26 = vector.load %arg6[%c0_16, %c0_17, %c0_18] : memref<1x128x256xbf16, #tpu.memory_space<vmem>>, vector<1x128x256xbf16>
    %27 = vector.shape_cast %26 : vector<1x128x256xbf16> to vector<128x256xbf16>
    %28 = arith.truncf %16 : vector<256x256xf32> to vector<256x256xbf16>
    %cst_19 = arith.constant dense<0.000000e+00> : vector<128x256xf32>
    %29 = tpu.matmul %27, %28, %cst_19 {dimension_numbers = #tpu.dot_dimension_numbers<[1], [0], [0], [1], [0, 0, 1, 1], [], []>} : vector<128x256xbf16>, vector<256x256xbf16>, vector<128x256xf32> -> vector<128x256xf32>
    %30 = arith.addf %25, %29 : vector<128x256xf32>
    %c0_20 = arith.constant 0 : index
    %c0_21 = arith.constant 0 : index
    %31 = vector.load %arg12[%c0_20, %c0_21] : memref<128x256xf32, #tpu.memory_space<vmem>>, vector<128x256xf32>
    tpu.vector_store %arg12[%c0_20, %c0_21], %30 {strides = array<i32>} : memref<128x256xf32, #tpu.memory_space<vmem>>, vector<128x256xf32>,
    %c0_22 = arith.constant 0 : index
    %c0_23 = arith.constant 0 : index
    %32 = vector.load %arg10[%c0_22, %c0_23] : memref<1x256xf32, #tpu.memory_space<vmem>>, vector<1x256xf32>
    tpu.vector_store %arg10[%c0_22, %c0_23], %11 {strides = array<i32>} : memref<1x256xf32, #tpu.memory_space<vmem>>, vector<1x256xf32>,
    %c0_i32_24 = arith.constant 0 : i32
    %33 = arith.cmpi eq, %arg2, %c0_i32_24 : i32
    %34 = arith.extui %33 : i1 to i32
    %c0_i32_25 = arith.constant 0 : i32
    %35 = arith.cmpi ne, %34, %c0_i32_25 : i32
    scf.if %35 {
      %c0_26 = arith.constant 0 : index
      %c0_27 = arith.constant 0 : index
      %36 = vector.load %arg12[%c0_26, %c0_27] : memref<128x256xf32, #tpu.memory_space<vmem>>, vector<128x256xf32>
      %c0_28 = arith.constant 0 : index
      %c0_29 = arith.constant 0 : index
      %37 = vector.load %arg11[%c0_28, %c0_29] : memref<1x256xf32, #tpu.memory_space<vmem>>, vector<1x256xf32>
      %38 = tpu.reciprocal %37 {approx = true} : vector<1x256xf32> -> vector<1x256xf32>
      %39 = vector.broadcast %38 : vector<1x256xf32> to vector<128x256xf32>
      %40 = arith.mulf %36, %39 : vector<128x256xf32>
      %c0_30 = arith.constant 0 : index
      %c0_31 = arith.constant 0 : index
      %41 = vector.load %arg7[%c0_30, %c0_31] : memref<128x128xbf16, #tpu.memory_space<vmem>>, vector<128x128xbf16>
      %42 = arith.truncf %40 : vector<128x256xf32> to vector<128x256xbf16>
      %cst_32 = arith.constant dense<0.000000e+00> : vector<128x256xf32>
      %43 = tpu.matmul %41, %42, %cst_32 {dimension_numbers = #tpu.dot_dimension_numbers<[1], [0], [0], [1], [0, 0, 1, 1], [], []>} : vector<128x128xbf16>, vector<128x256xbf16>, vector<128x256xf32> -> vector<128x256xf32>
      %c0_33 = arith.constant 0 : index
      %c0_34 = arith.constant 0 : index
      %44 = vector.load %arg8[%c0_33, %c0_34] : memref<128x1xf32, #tpu.memory_space<vmem>>, vector<128x1xf32>
      %45 = vector.broadcast %44 : vector<128x1xf32> to vector<128x256xf32>
      %46 = arith.addf %43, %45 : vector<128x256xf32>
      %c0_35 = arith.constant 0 : index
      %c0_36 = arith.constant 0 : index
      %c0_37 = arith.constant 0 : index
      %47 = vector.load %arg3[%c0_35, %c0_36, %c0_37] : memref<1x128x256xf32, #tpu.memory_space<vmem>>, vector<1x128x256xf32>
      %48 = vector.shape_cast %47 : vector<1x128x256xf32> to vector<128x256xf32>
      %49 = arith.addf %46, %48 : vector<128x256xf32>
      %c0_38 = arith.constant 0 : index
      %c0_39 = arith.constant 0 : index
      %c0_40 = arith.constant 0 : index
      %50 = vector.load %arg9[%c0_38, %c0_39, %c0_40] : memref<1x128x256xf32, #tpu.memory_space<vmem>>, vector<1x128x256xf32>
      %51 = vector.shape_cast %50 : vector<1x128x256xf32> to vector<128x256xf32>
      %52 = vector.shape_cast %49 : vector<128x256xf32> to vector<1x128x256xf32>
      tpu.vector_store %arg9[%c0_38, %c0_39, %c0_40], %52 {strides = array<i32>} : memref<1x128x256xf32, #tpu.memory_space<vmem>>, vector<1x128x256xf32>,
    } else {
    }
    return
  }
  func.func @transform_0(%arg0: i32, %arg1: i32, %arg2: i32) -> (i32, i32, i32) {
    %c0_i32 = arith.constant 0 : i32
    %c0_i32_0 = arith.constant 0 : i32
    return %arg0, %c0_i32, %arg1 : i32, i32, i32
  }
  func.func @transform_1(%arg0: i32, %arg1: i32, %arg2: i32) -> (i32, i32, i32) {
    %c0_i32 = arith.constant 0 : i32
    %c0_i32_0 = arith.constant 0 : i32
    return %arg0, %c0_i32, %arg1 : i32, i32, i32
  }
  func.func @transform_2(%arg0: i32, %arg1: i32, %arg2: i32) -> (i32, i32, i32) {
    %c0_i32 = arith.constant 0 : i32
    %c0_i32_0 = arith.constant 0 : i32
    return %arg0, %arg2, %c0_i32 : i32, i32, i32
  }
  func.func @transform_3(%arg0: i32, %arg1: i32, %arg2: i32) -> (i32, i32, i32) {
    %c0_i32 = arith.constant 0 : i32
    %c0_i32_0 = arith.constant 0 : i32
    return %arg0, %c0_i32, %arg2 : i32, i32, i32
  }
  func.func @transform_4(%arg0: i32, %arg1: i32, %arg2: i32) -> (i32, i32) {
    %c0_i32 = arith.constant 0 : i32
    %c0_i32_0 = arith.constant 0 : i32
    %c0_i32_1 = arith.constant 0 : i32
    return %c0_i32, %c0_i32_0 : i32, i32
  }
  func.func @transform_5(%arg0: i32, %arg1: i32, %arg2: i32) -> (i32, i32) {
    %c0_i32 = arith.constant 0 : i32
    %c0_i32_0 = arith.constant 0 : i32
    %c0_i32_1 = arith.constant 0 : i32
    return %c0_i32, %c0_i32_0 : i32, i32
  }
  func.func @transform_6(%arg0: i32, %arg1: i32, %arg2: i32) -> (i32, i32, i32) {
    %c0_i32 = arith.constant 0 : i32
    %c0_i32_0 = arith.constant 0 : i32
    return %arg0, %c0_i32, %arg1 : i32, i32, i32
  }
}

</mosaic_0001>

<bundles_post_ra>
// kernel: vae_attention_block.1
= control target key start
LH: loop header
LB: loop body
LE: loop exit
PB: predicated region body
PF: predicated region fallthrough
CT: control target
= control target key end

     0   :  { %s2663_s21 = smov 0   ;;  %s2665_s22 = smov 0   ;;  %s3568_s0 = inlined_call_operand.vmem [shape: f32[2,128,256], index: 0, kind: input, shape index: {}]   ;;  %s3569_s1 = inlined_call_operand.vmem [shape: bf16[2,128,256], index: 1, kind: input, shape index: {}]   ;;  %s3570_s2 = inlined_call_operand.vmem [shape: bf16[2,256,128], index: 2, kind: input, shape index: {}]   ;;  %s3571_s3 = inlined_call_operand.vmem [shape: bf16[2,128,256], index: 3, kind: input, shape index: {}]   ;;  %s3572_s4 = inlined_call_operand.vmem [shape: bf16[128,128], index: 4, kind: input, shape index: {}]   ;;  %s3573_s5 = inlined_call_operand.vmem [shape: f32[128,1], index: 5, kind: input, shape index: {}]   ;;  %s3574_s6 = inlined_call_operand.vmem [shape: f32[2,128,256], index: 6, kind: output, shape index: {}]  }
   0x1   :  { %s2667_s23 = smov 0  }
   0x2 LB: > { %s35_s24 = sadd.s32 1, %s2618_s22  ;;  %p2260_p0 = scmp.ge.s32.totalorder %s2622_s23, 1  ;;  %s2622_s23 = sphi %s2667_s23, %s16_s23   ;;  %s2618_s22 = sphi %s2665_s22, %s3784_s22   ;;  %s2614_s21 = sphi %s2663_s21, %s3783_s21  }
   0x3   : > { %p37_p1 = scmp.ge.s32.totalorder %s35_s24, 2  ;;  %p291_p2 = scmp.lt.s32.totalorder %s2622_s23, 3 }
   0x5   : > { %s3786_s24 = smov (%p37_p1, %s35_s24), 0  ;;  %p292_p3 = pnand %p2260_p0, %p291_p2 }
   0x7   : > { %295 = sbr.rel (%p292_p3) target bundleno = 1040 (0x410), region = 44 }
   0xe   : > { %p357_p4 = scmp.lt.s32.totalorder %s2614_s21, 1  ;;  %v3575_v0 = vmov 0   ;;  %v3577_v37 = vlaneseq  ;;  %v3638_v41 = vmov 0  ;;  %v2625_v44 = vmov -inf  }
   0xf   : > { %705 = vmatprep.mubr.bf16.mxu0 %v3575_v0  ;;  %2394 = vset.pattern.permute.xlu0 %v3575_v0  ;;  %v2626_v45 = vmov 0.0  }
  0x10   : > { %s3788_s21 = smov (!%p357_p4, %s2614_s21), 1  ;;  %2395 = vset.pattern.permute.xlu1 %v3575_v0  ;;  %vm2763_vm0 = vcmp.lt.s32.totalorder %v3577_v37, 256 }
  0x11   : > { %s2687_s25 = sshll.u32 %s3788_s21, 7  ;;  %v3639_v41 = vsel %vm2763_vm0, 4294967295, %v3638_v41  ;;  %415 = vst.msk [vmem:[#allocation2] sm:$0x3] %vm2763_vm0, %v2625_v44  ;;  %416 = vst.msk [vmem:[#allocation3] sm:$0x3] %vm2763_vm0, %v2626_v45 }
  0x12   : > { %s2693_s28 = scalar_lea.vmem %s3569_s1, %s2687_s25  ;;  %s2706_s7 = scalar_lea.vmem %s3570_s2, %s2687_s25  ;;  %3640 = vst [vmem:[#allocation5_spill] sm:$0xff] %v3639_v41 }
  0x13   : > { %v2396_v1 = vld [vmem:[%s2693_s28 + $0x4] ss:$8 sps:$4 sm:$0xff]   ;;  %v2398_v2 = vld [vmem:[%s2693_s28] ss:$8 sps:$4 sm:$0xff]   ;;  %v2399_v3 = vld [vmem:[%s2693_s28 + $0x14] ss:$8 sps:$4 sm:$0xff]   ;;  %s3072_s10 = scalar_lea.vmem %s3571_s3, %s2687_s25 }
  0x14   : > { %673 = vmatprep.subr.bf16.mxu0 %v2396_v1  ;;  %v2401_v4 = vld [vmem:[%s2693_s28 + $0x10] ss:$8 sps:$4 sm:$0xff]   ;;  %v2402_v5 = vld [vmem:[%s2693_s28 + $0x24] ss:$8 sps:$4 sm:$0xff]   ;;  %v2404_v6 = vld [vmem:[%s2693_s28 + $0x20] ss:$8 sps:$4 sm:$0xff]  }
  0x15   : > { %674 = vmatpush1.bf16.msra.mxu0 %v2398_v2  ;;  %v2405_v7 = vld [vmem:[%s2693_s28 + $0x34] ss:$8 sps:$4 sm:$0xff]   ;;  %v2407_v8 = vld [vmem:[%s2693_s28 + $0x30] ss:$8 sps:$4 sm:$0xff]   ;;  %v2408_v9 = vld [vmem:[%s2693_s28 + $0x44] ss:$8 sps:$4 sm:$0xff]  }
  0x16   : > { %675 = vmatprep.subr.bf16.mxu0 %v2399_v3  ;;  %v2410_v10 = vld [vmem:[%s2693_s28 + $0x40] ss:$8 sps:$4 sm:$0xff]   ;;  %v2411_v11 = vld [vmem:[%s2693_s28 + $0x54] ss:$8 sps:$4 sm:$0xff]   ;;  %v2413_v12 = vld [vmem:[%s2693_s28 + $0x50] ss:$8 sps:$4 sm:$0xff]  }
  0x17   : > { %v2414_v13 = vld [vmem:[%s2693_s28 + $0x64] ss:$8 sps:$4 sm:$0xff]   ;;  %v2416_v14 = vld [vmem:[%s2693_s28 + $0x60] ss:$8 sps:$4 sm:$0xff]   ;;  %v2417_v15 = vld [vmem:[%s2693_s28 + $0x74] ss:$8 sps:$4 sm:$0xff]  }
  0x18   : > { %v2419_v16 = vld [vmem:[%s2693_s28 + $0x70] ss:$8 sps:$4 sm:$0xff]   ;;  %v2420_v17 = vld [vmem:[%s2706_s7] sm:$0xff]   ;;  %v2421_v18 = vld [vmem:[%s2706_s7 + $0x8] sm:$0xff]   ;;  %s2329_s19 = sshll.u32 %s3788_s21, 8 }
  0x19   : > { %676 = vmatpush1.bf16.msra.mxu0 %v2401_v4  ;;  %v2422_v19 = vld [vmem:[%s2706_s7 + $0x10] sm:$0xff]   ;;  %v2423_v20 = vld [vmem:[%s2706_s7 + $0x18] sm:$0xff]   ;;  %v2424_v21 = vld [vmem:[%s2706_s7 + $0x20] sm:$0xff]   ;;  %s3488_s26 = scalar_lea.vmem %s3568_s0, %s2329_s19  ;;  %s3495_s21 = scalar_lea.vmem %s3574_s6, %s2329_s19 }
  0x1a   : > { %677 = vmatprep.subr.bf16.mxu0 %v2402_v5  ;;  %v2425_v22 = vld [vmem:[%s2706_s7 + $0x28] sm:$0xff]   ;;  %v2426_v23 = vld [vmem:[%s2706_s7 + $0x30] sm:$0xff]   ;;  %v2427_v24 = vld [vmem:[%s2706_s7 + $0x38] sm:$0xff]  }
  0x1b   : > { %v2428_v25 = vld [vmem:[%s2706_s7 + $0x40] sm:$0xff]   ;;  %v2429_v26 = vld [vmem:[%s2706_s7 + $0x48] sm:$0xff]   ;;  %v2430_v27 = vld [vmem:[%s2706_s7 + $0x50] sm:$0xff]  }
  0x1c   : > { %v2431_v28 = vld [vmem:[%s2706_s7 + $0x58] sm:$0xff]   ;;  %v2432_v29 = vld [vmem:[%s2706_s7 + $0x60] sm:$0xff]   ;;  %v2433_v30 = vld [vmem:[%s2706_s7 + $0x68] sm:$0xff]  }
  0x1d   : > { %678 = vmatpush1.bf16.msra.mxu0 %v2404_v6  ;;  %v2434_v31 = vld [vmem:[%s2706_s7 + $0x70] sm:$0xff]   ;;  %v2435_v32 = vld [vmem:[%s2706_s7 + $0x78] sm:$0xff]   ;;  %v2441_v41 = vld [vmem:[%s3072_s10 + $0x24] ss:$8 sps:$4 sm:$0xff]  }
  0x1e   : > { %679 = vmatprep.subr.bf16.mxu0 %v2405_v7  ;;  %1521 = vmatprep.mubr.bf16.mxu1 %v2441_v41 }
  0x21   : > { %680 = vmatpush1.bf16.msra.mxu0 %v2407_v8 }
  0x22   : > { %681 = vmatprep.subr.bf16.mxu0 %v2408_v9 }
  0x25   : > { %682 = vmatpush1.bf16.msra.mxu0 %v2410_v10 }
  0x26   : > { %683 = vmatprep.subr.bf16.mxu0 %v2411_v11 }
  0x29   : > { %684 = vmatpush1.bf16.msra.mxu0 %v2413_v12 }
  0x2a   : > { %685 = vmatprep.subr.bf16.mxu0 %v2414_v13 }
  0x2d   : > { %686 = vmatpush1.bf16.msra.mxu0 %v2416_v14 }
  0x2e   : > { %687 = vmatprep.subr.bf16.mxu0 %v2417_v15 }
  0x31   : > { %688 = vmatpush1.bf16.msra.mxu0 %v2419_v16 }
  0x34   : > { %706 = vmatmul.mubr.bf16.vlgmr.msra.gmra.mrb[0].mxu0 %v2420_v17 }
  0x35   : > { %715 = vmatprep.mubr.bf16.mxu0 %v3575_v0 }
  0x3c   : > { %716 = vmatmul.mubr.bf16.gmra.mrb[4].mxu0 %v2421_v18 }
  0x3d   : > { %725 = vmatprep.mubr.bf16.mxu0 %v3575_v0 }
  0x44   : > { %726 = vmatmul.mubr.bf16.gmra.mrb[8].mxu0 %v2422_v19 }
  0x45   : > { %735 = vmatprep.mubr.bf16.mxu0 %v3575_v0 }
  0x4c   : > { %736 = vmatmul.mubr.bf16.gmra.mrb[12].mxu0 %v2423_v20 }
  0x4d   : > { %745 = vmatprep.mubr.bf16.mxu0 %v3575_v0 }
  0x54   : > { %746 = vmatmul.mubr.bf16.gmra.mrb[16].mxu0 %v2424_v21 }
  0x55   : > { %755 = vmatprep.mubr.bf16.mxu0 %v3575_v0 }
  0x5c   : > { %756 = vmatmul.mubr.bf16.gmra.mrb[20].mxu0 %v2425_v22 }
  0x5d   : > { %765 = vmatprep.mubr.bf16.mxu0 %v3575_v0 }
  0x64   : > { %766 = vmatmul.mubr.bf16.gmra.mrb[24].mxu0 %v2426_v23 }
  0x65   : > { %775 = vmatprep.mubr.bf16.mxu0 %v3575_v0 }
  0x6c   : > { %776 = vmatmul.mubr.bf16.gmra.mrb[28].mxu0 %v2427_v24 }
  0x6d   : > { %785 = vmatprep.mubr.bf16.mxu0 %v3575_v0 }
  0x74   : > { %786 = vmatmul.mubr.bf16.gmra.mrb[32].mxu0 %v2428_v25 }
  0x75   : > { %795 = vmatprep.mubr.bf16.mxu0 %v3575_v0 }
  0x7c   : > { %796 = vmatmul.mubr.bf16.gmra.mrb[36].mxu0 %v2429_v26 }
  0x7d   : > { %805 = vmatprep.mubr.bf16.mxu0 %v3575_v0 }
  0x84   : > { %806 = vmatmul.mubr.bf16.gmra.mrb[40].mxu0 %v2430_v27 }
  0x85   : > { %815 = vmatprep.mubr.bf16.mxu0 %v3575_v0 }
  0x8c   : > { %816 = vmatmul.mubr.bf16.gmra.mrb[44].mxu0 %v2431_v28 }
  0x8d   : > { %825 = vmatprep.mubr.bf16.mxu0 %v3575_v0 }
  0x94   : > { %826 = vmatmul.mubr.bf16.gmra.mrb[48].mxu0 %v2432_v29 }
  0x95   : > { %835 = vmatprep.mubr.bf16.mxu0 %v3575_v0 }
  0x9c   : > { %836 = vmatmul.mubr.bf16.gmra.mrb[52].mxu0 %v2433_v30 }
  0x9d   : > { %845 = vmatprep.mubr.bf16.mxu0 %v3575_v0 }
  0xa4   : > { %846 = vmatmul.mubr.bf16.gmra.mrb[56].mxu0 %v2434_v31 }
  0xa5   : > { %855 = vmatprep.mubr.bf16.mxu0 %v3575_v0 }
  0xac   : > { %856 = vmatmul.mubr.bf16.gmra.mrb[60].mxu0 %v2435_v32 }
 0x107   : > { %v2748_v33 = vpop.f32.mrb[0].mxu0 }
 0x108   : > { %v2750_v34 = vpop.f32.mrb[1].mxu0 }
 0x109   : > { %v2752_v35 = vpop.f32.mrb[2].mxu0 }
 0x10a   : > { %v2754_v36 = vpop.f32.mrb[3].mxu0 }
 0x10f   : > { %v2756_v38 = vpop.f32.mrb[4].mxu0 }
 0x110   : > { %v867_v39 = vmax.f32 %v2748_v33, %v2756_v38  ;;  %v2760_v40 = vpop.f32.mrb[5].mxu0 }
 0x111   : > { %v904_v42 = vmax.f32 %v2750_v34, %v2760_v40  ;;  %v2769_v43 = vpop.f32.mrb[6].mxu0 }
 0x112   : > { %v868_v46 = vmax.f32 %v2752_v35, %v2769_v43  ;;  %v2777_v47 = vpop.f32.mrb[7].mxu0 }
 0x113   : > { %v905_v48 = vmax.f32 %v2754_v36, %v2777_v47 }
 0x117   : > { %v2781_v49 = vpop.f32.mrb[8].mxu0 }
 0x118   : > { %v869_v50 = vmax.f32 %v867_v39, %v2781_v49  ;;  %v2784_v51 = vpop.f32.mrb[9].mxu0 }
 0x119   : > { %v906_v52 = vmax.f32 %v904_v42, %v2784_v51  ;;  %v2787_v53 = vpop.f32.mrb[10].mxu0 }
 0x11a   : > { %v870_v54 = vmax.f32 %v868_v46, %v2787_v53  ;;  %v2790_v55 = vpop.f32.mrb[11].mxu0 }
 0x11b   : > { %v907_v56 = vmax.f32 %v905_v48, %v2790_v55 }
 0x11f   : > { %v2793_v57 = vpop.f32.mrb[12].mxu0 }
 0x120   : > { %v871_v58 = vmax.f32 %v869_v50, %v2793_v57  ;;  %v2796_v59 = vpop.f32.mrb[13].mxu0 }
 0x121   : > { %v908_v60 = vmax.f32 %v906_v52, %v2796_v59  ;;  %v2799_v61 = vpop.f32.mrb[14].mxu0 }
 0x122   : > { %v872_v62 = vmax.f32 %v870_v54, %v2799_v61  ;;  %v2802_v63 = vpop.f32.mrb[15].mxu0 }
 0x123   : > { %v909_v1 = vmax.f32 %v907_v56, %v2802_v63 }
 0x127   : > { %v2805_v2 = vpop.f32.mrb[16].mxu0 }
 0x128   : > { %v873_v3 = vmax.f32 %v871_v58, %v2805_v2  ;;  %v2808_v4 = vpop.f32.mrb[17].mxu0 }
 0x129   : > { %v910_v5 = vmax.f32 %v908_v60, %v2808_v4  ;;  %v2811_v6 = vpop.f32.mrb[18].mxu0 }
 0x12a   : > { %v874_v7 = vmax.f32 %v872_v62, %v2811_v6  ;;  %v2814_v8 = vpop.f32.mrb[19].mxu0 }
 0x12b   : > { %v911_v9 = vmax.f32 %v909_v1, %v2814_v8 }
 0x12f   : > { %v2817_v10 = vpop.f32.mrb[20].mxu0 }
 0x130   : > { %v875_v11 = vmax.f32 %v873_v3, %v2817_v10  ;;  %v2820_v12 = vpop.f32.mrb[21].mxu0 }
 0x131   : > { %v912_v13 = vmax.f32 %v910_v5, %v2820_v12  ;;  %v2823_v14 = vpop.f32.mrb[22].mxu0 }
 0x132   : > { %v876_v15 = vmax.f32 %v874_v7, %v2823_v14  ;;  %v2826_v16 = vpop.f32.mrb[23].mxu0 }
 0x133   : > { %v913_v17 = vmax.f32 %v911_v9, %v2826_v16 }
 0x137   : > { %v2829_v18 = vpop.f32.mrb[24].mxu0 }
 0x138   : > { %v877_v19 = vmax.f32 %v875_v11, %v2829_v18  ;;  %v2832_v20 = vpop.f32.mrb[25].mxu0 }
 0x139   : > { %v914_v21 = vmax.f32 %v912_v13, %v2832_v20  ;;  %v2835_v22 = vpop.f32.mrb[26].mxu0 }
 0x13a   : > { %v878_v23 = vmax.f32 %v876_v15, %v2835_v22  ;;  %v2838_v24 = vpop.f32.mrb[27].mxu0 }
 0x13b   : > { %v915_v25 = vmax.f32 %v913_v17, %v2838_v24 }
 0x13f   : > { %v2841_v26 = vpop.f32.mrb[28].mxu0 }
 0x140   : > { %v879_v27 = vmax.f32 %v877_v19, %v2841_v26  ;;  %v2844_v28 = vpop.f32.mrb[29].mxu0 }
 0x141   : > { %v916_v29 = vmax.f32 %v914_v21, %v2844_v28  ;;  %v2847_v30 = vpop.f32.mrb[30].mxu0 }
 0x142   : > { %v880_v31 = vmax.f32 %v878_v23, %v2847_v30  ;;  %v2850_v32 = vpop.f32.mrb[31].mxu0 }
 0x143   : > { %v917_v39 = vmax.f32 %v915_v25, %v2850_v32 }
 0x147   : > { %v2853_v42 = vpop.f32.mrb[32].mxu0 }
 0x148   : > { %v881_v44 = vmax.f32 %v879_v27, %v2853_v42  ;;  %v2856_v45 = vpop.f32.mrb[33].mxu0 }
 0x149   : > { %v918_v46 = vmax.f32 %v916_v29, %v2856_v45  ;;  %v2859_v48 = vpop.f32.mrb[34].mxu0 }
 0x14a   : > { %v882_v50 = vmax.f32 %v880_v31, %v2859_v48  ;;  %v2862_v52 = vpop.f32.mrb[35].mxu0 }
 0x14b   : > { %v919_v54 = vmax.f32 %v917_v39, %v2862_v52 }
 0x14f   : > { %v2865_v56 = vpop.f32.mrb[36].mxu0 }
 0x150   : > { %v883_v58 = vmax.f32 %v881_v44, %v2865_v56  ;;  %v2868_v60 = vpop.f32.mrb[37].mxu0 }
 0x151   : > { %v920_v62 = vmax.f32 %v918_v46, %v2868_v60  ;;  %v2871_v1 = vpop.f32.mrb[38].mxu0 }
 0x152   : > { %3641 = vst [vmem:[#allocation6_spill] sm:$0xff] %v2871_v1  ;;  %v884_v3 = vmax.f32 %v882_v50, %v2871_v1  ;;  %v2874_v5 = vpop.f32.mrb[39].mxu0 }
 0x153   : > { %3642 = vst [vmem:[#allocation7_spill] sm:$0xff] %v2874_v5  ;;  %v921_v7 = vmax.f32 %v919_v54, %v2874_v5 }
 0x157   : > { %v2877_v9 = vpop.f32.mrb[40].mxu0 }
 0x158   : > { %3643 = vst [vmem:[#allocation8_spill] sm:$0xff] %v2877_v9  ;;  %v885_v11 = vmax.f32 %v883_v58, %v2877_v9  ;;  %v2880_v13 = vpop.f32.mrb[41].mxu0 }
 0x159   : > { %3644 = vst [vmem:[#allocation9_spill] sm:$0xff] %v2880_v13  ;;  %v922_v15 = vmax.f32 %v920_v62, %v2880_v13  ;;  %v2883_v17 = vpop.f32.mrb[42].mxu0  ;;  %v3667_v13 = vlaneseq }
 0x15a   : > { %3645 = vst [vmem:[#allocation10_spill] sm:$0xff] %v2883_v17  ;;  %v886_v19 = vmax.f32 %v884_v3, %v2883_v17  ;;  %v2886_v21 = vpop.f32.mrb[43].mxu0 }
 0x15b   : > { %3646 = vst [vmem:[#allocation11_spill] sm:$0xff] %v2886_v21  ;;  %v923_v23 = vmax.f32 %v921_v7, %v2886_v21  ;;  %v948_v9 = vshrl.u32 %v3667_v13, 7 }
 0x15f   : > { %v2889_v25 = vpop.f32.mrb[44].mxu0 }
 0x160   : > { %3647 = vst [vmem:[#allocation12_spill] sm:$0xff] %v2889_v25  ;;  %v887_v27 = vmax.f32 %v885_v11, %v2889_v25  ;;  %v2892_v29 = vpop.f32.mrb[45].mxu0  ;;  %v2627_v25 = vmov 1966171168  }
 0x161   : > { %3648 = vst [vmem:[#allocation13_spill] sm:$0xff] %v2892_v29  ;;  %v924_v31 = vmax.f32 %v922_v15, %v2892_v29  ;;  %v2895_v39 = vpop.f32.mrb[46].mxu0 }
 0x162   : > { %3649 = vst [vmem:[#allocation14_spill] sm:$0xff] %v2895_v39  ;;  %v888_v44 = vmax.f32 %v886_v19, %v2895_v39  ;;  %v2898_v46 = vpop.f32.mrb[47].mxu0 }
 0x163   : > { %3650 = vst [vmem:[#allocation15_spill] sm:$0xff] %v2898_v46  ;;  %v925_v50 = vmax.f32 %v923_v23, %v2898_v46 }
 0x167   : > { %v2901_v54 = vpop.f32.mrb[48].mxu0  ;;  %v3679_v13 = vld [vmem:[#allocation12_spill] sm:$0xff] }
 0x168   : > { %3651 = vst [vmem:[#allocation16_spill] sm:$0xff] %v2901_v54  ;;  %v889_v58 = vmax.f32 %v887_v27, %v2901_v54  ;;  %v2904_v62 = vpop.f32.mrb[49].mxu0 }
 0x169   : > { %3652 = vst [vmem:[#allocation17_spill] sm:$0xff] %v2904_v62  ;;  %v926_v3 = vmax.f32 %v924_v31, %v2904_v62  ;;  %v2907_v7 = vpop.f32.mrb[50].mxu0 }
 0x16a   : > { %3653 = vst [vmem:[#allocation18_spill] sm:$0xff] %v2907_v7  ;;  %v890_v11 = vmax.f32 %v888_v44, %v2907_v7  ;;  %v2910_v15 = vpop.f32.mrb[51].mxu0 }
 0x16b   : > { %3654 = vst [vmem:[#allocation19_spill] sm:$0xff] %v2910_v15  ;;  %v927_v19 = vmax.f32 %v925_v50, %v2910_v15 }
 0x16f   : > { %v2913_v0 = vpop.f32.mrb[52].mxu0 }
 0x170   : > { %3655 = vst [vmem:[#allocation20_spill] sm:$0xff] %v2913_v0  ;;  %v891_v23 = vmax.f32 %v889_v58, %v2913_v0  ;;  %v2916_v37 = vpop.f32.mrb[53].mxu0 }
 0x171   : > { %3656 = vst [vmem:[#allocation21_spill] sm:$0xff] %v2916_v37  ;;  %v928_v27 = vmax.f32 %v926_v3, %v2916_v37  ;;  %v2919_v54 = vpop.f32.mrb[54].mxu0 }
 0x172   : > { %3657 = vst [vmem:[#allocation22_spill] sm:$0xff] %v2919_v54  ;;  %v892_v31 = vmax.f32 %v890_v11, %v2919_v54  ;;  %v2922_v62 = vpop.f32.mrb[55].mxu0 }
 0x173   : > { %3658 = vst [vmem:[#allocation23_spill] sm:$0xff] %v2922_v62  ;;  %v929_v44 = vmax.f32 %v927_v19, %v2922_v62 }
 0x177   : > { %v2925_v7 = vpop.f32.mrb[56].mxu0 }
 0x178   : > { %3659 = vst [vmem:[#allocation24_spill] sm:$0xff] %v2925_v7  ;;  %v893_v50 = vmax.f32 %v891_v23, %v2925_v7  ;;  %v2928_v15 = vpop.f32.mrb[57].mxu0 }
 0x179   : > { %3660 = vst [vmem:[#allocation25_spill] sm:$0xff] %v2928_v15  ;;  %v930_v58 = vmax.f32 %v928_v27, %v2928_v15  ;;  %v2931_v0 = vpop.f32.mrb[58].mxu0 }
 0x17a   : > { %3661 = vst [vmem:[#allocation26_spill] sm:$0xff] %v2931_v0  ;;  %v894_v3 = vmax.f32 %v892_v31, %v2931_v0  ;;  %v2934_v37 = vpop.f32.mrb[59].mxu0 }
 0x17b   : > { %3662 = vst [vmem:[#allocation27_spill] sm:$0xff] %v2934_v37  ;;  %v931_v11 = vmax.f32 %v929_v44, %v2934_v37 }
 0x17f   : > { %v2937_v54 = vpop.f32.mrb[60].mxu0 }
 0x180   : > { %3663 = vst [vmem:[#allocation28_spill] sm:$0xff] %v2937_v54  ;;  %v895_v19 = vmax.f32 %v893_v50, %v2937_v54  ;;  %v2940_v62 = vpop.f32.mrb[61].mxu0  ;;  %v945_v50 = vunpack.c.l.s4 %v2627_v25 }
 0x181   : > { %3664 = vst [vmem:[#allocation29_spill] sm:$0xff] %v2940_v62  ;;  %v932_v23 = vmax.f32 %v930_v58, %v2940_v62  ;;  %v2943_v7 = vpop.f32.mrb[62].mxu0 }
 0x182   : > { %3665 = vst [vmem:[#allocation30_spill] sm:$0xff] %v2943_v7  ;;  %v896_v27 = vmax.f32 %v894_v3, %v2943_v7  ;;  %v2946_v15 = vpop.f32.mrb[63].mxu0  ;;  %v946_v62 = vunpack.c.0.s8 %v945_v50  ;;  %v3673_v50 = vld [vmem:[#allocation6_spill] sm:$0xff] }
 0x183   : > { %3666 = vst [vmem:[#allocation31_spill] sm:$0xff] %v2946_v15  ;;  %v933_v31 = vmax.f32 %v931_v11, %v2946_v15 }
 0x184   : > { %v897_v0 = vmax.f32 %v895_v19, %v896_v27  ;;  %v2950_v11 = vsub.s32 %v946_v62, %v948_v9  ;;  %v2438_v27 = vld [vmem:[%s3072_s10 + $0x4] ss:$8 sps:$4 sm:$0xff]  }
 0x185   : > { %v934_v46 = vmax.f32 %v932_v23, %v933_v31  ;;  %1501 = vmatprep.mubr.bf16.mxu0 %v2438_v27 }
 0x186   : > { %v898_v39 = vrot.slane %v897_v0, 4  ;;  %3668 = vst [vmem:[#allocation32_spill] sm:$0xff] %v2950_v11 }
 0x187   : > { %v935_v44 = vrot.slane %v934_v46, 4 }
 0x188   : > { %v899_v37 = vmax.f32 %v897_v0, %v898_v39  ;;  %v2953_v0 = vld [vmem:[#allocation2] sm:$0x3]  ;;  %v2956_v39 = vsub.s32 0, %v948_v9  ;;  %v3696_v62 = vld [vmem:[#allocation29_spill] sm:$0xff] }
 0x189   : > { %v936_v29 = vmax.f32 %v934_v46, %v935_v44  ;;  %3669 = vst [vmem:[#allocation33_spill] sm:$0xff] %v2953_v0 }
 0x18a   : > { %v900_v54 = vrot.slane %v899_v37, 2  ;;  %3670 = vst [vmem:[#allocation34_spill] sm:$0xff] %v2956_v39 }
 0x18b   : > { %v937_v21 = vrot.slane %v936_v29, 2 }
 0x18c   : > { %v901_v17 = vmax.f32 %v899_v37, %v900_v54  ;;  %v2958_v37 = vsub.s32 1, %v948_v9  ;;  %v3690_v9 = vld [vmem:[#allocation23_spill] sm:$0xff]  ;;  %v3697_v54 = vld [vmem:[#allocation30_spill] sm:$0xff] }
 0x18d   : > { %v938_v58 = vmax.f32 %v936_v29, %v937_v21 }
 0x18e   : > { %v902_v3 = vrot.slane %v901_v17, 1  ;;  %3671 = vst [vmem:[#allocation35_spill] sm:$0xff] %v2958_v37 }
 0x18f   : > { %v939_v7 = vrot.slane %v938_v58, 1 }
 0x190   : > { %v903_v5 = vmax.f32 %v901_v17, %v902_v3  ;;  %v3675_v3 = vld [vmem:[#allocation8_spill] sm:$0xff] }
 0x191   : > { %v940_v1 = vmax.f32 %v938_v58, %v939_v7  ;;  %v3674_v58 = vld [vmem:[#allocation7_spill] sm:$0xff]  ;;  %v3695_v7 = vld [vmem:[#allocation28_spill] sm:$0xff] }
 0x193   : > { %v943_v19 = vcombine.low %v903_v5, %v940_v1  ;;  %v3691_v5 = vld [vmem:[#allocation24_spill] sm:$0xff] }
 0x195   : > { %v950_v23 = vrot.slane %v943_v19, %v2950_v11  ;;  %v3676_v19 = vld [vmem:[#allocation9_spill] sm:$0xff] }
 0x197   : > { %v957_v25 = vrot.slane %v950_v23, %v2950_v11  ;;  %v3677_v23 = vld [vmem:[#allocation10_spill] sm:$0xff] }
 0x199   : > { %v2961_v21 = vmax.f32 %v2953_v0, %v957_v25  ;;  %v3678_v25 = vld [vmem:[#allocation11_spill] sm:$0xff] }
 0x19b   : > { %3672 = vst [vmem:[#allocation36_spill] sm:$0xff] %v2961_v21  ;;  %v2967_v17 = vrot.slane %v2961_v21, %v2956_v39  ;;  %v2971_v1 = vrot.slane %v2961_v21, %v2958_v37  ;;  %1646 = vst.msk [vmem:[#allocation2] sm:$0x3] %vm2763_vm0, %v2961_v21  ;;  %v3693_v39 = vld [vmem:[#allocation26_spill] sm:$0xff] }
 0x19d   : > { %v3698_v37 = vsub.f32 %v2748_v33, %v2967_v17  ;;  %v3699_v0 = vsub.f32 %v2750_v34, %v2971_v1  ;;  %v3700_v44 = vsub.f32 %v2752_v35, %v2967_v17  ;;  %v3701_v27 = vsub.f32 %v2754_v36, %v2971_v1 }
 0x19e   : > { %v3702_v29 = vsub.f32 %v2756_v38, %v2967_v17  ;;  %v3703_v33 = vsub.f32 %v2760_v40, %v2971_v1  ;;  %v3704_v41 = vsub.f32 %v2769_v43, %v2967_v17  ;;  %v3705_v36 = vsub.f32 %v2777_v47, %v2971_v1 }
 0x19f   : > { %v1038_v21 = vmul.f32 1.442695, %v3698_v37  ;;  %v1040_v11 = vmul.f32 1.442695, %v3699_v0  ;;  %v1042_v31 = vmul.f32 1.442695, %v3700_v44  ;;  %v3706_v38 = vsub.f32 %v2781_v49, %v2967_v17 }
 0x1a0   : > { %v1044_v46 = vmul.f32 1.442695, %v3701_v27  ;;  %v1046_v15 = vmul.f32 1.442695, %v3702_v29  ;;  %v1048_v34 = vmul.f32 1.442695, %v3703_v33  ;;  %v3707_v40 = vsub.f32 %v2784_v51, %v2971_v1 }
 0x1a1   : > { %2468 = vpow2.f32 %v1038_v21  ;;  %v1050_v35 = vmul.f32 1.442695, %v3704_v41  ;;  %v1052_v0 = vmul.f32 1.442695, %v3705_v36  ;;  %v1054_v37 = vmul.f32 1.442695, %v3706_v38 }
 0x1a2   : > { %2470 = vpow2.f32 %v1040_v11  ;;  %v1056_v11 = vmul.f32 1.442695, %v3707_v40  ;;  %v3708_v43 = vsub.f32 %v2787_v53, %v2967_v17  ;;  %v3709_v47 = vsub.f32 %v2790_v55, %v2971_v1 }
 0x1a3   : > { %2472 = vpow2.f32 %v1042_v31  ;;  %v3710_v49 = vsub.f32 %v2793_v57, %v2967_v17  ;;  %v3711_v51 = vsub.f32 %v2796_v59, %v2971_v1  ;;  %v3712_v53 = vsub.f32 %v2799_v61, %v2967_v17 }
 0x1a4   : > { %2474 = vpow2.f32 %v1044_v46  ;;  %v1058_v21 = vmul.f32 1.442695, %v3708_v43  ;;  %v1060_v29 = vmul.f32 1.442695, %v3709_v47  ;;  %v3713_v55 = vsub.f32 %v2802_v63, %v2971_v1 }
 0x1a5   : > { %2476 = vpow2.f32 %v1046_v15  ;;  %v1062_v15 = vmul.f32 1.442695, %v3710_v49  ;;  %v1064_v46 = vmul.f32 1.442695, %v3711_v51  ;;  %v1066_v44 = vmul.f32 1.442695, %v3712_v53 }
 0x1a6   : > { %2478 = vpow2.f32 %v1048_v34  ;;  %v1068_v33 = vmul.f32 1.442695, %v3713_v55  ;;  %v3714_v57 = vsub.f32 %v2805_v2, %v2967_v17 }
 0x1a7   : > { %2480 = vpow2.f32 %v1050_v35  ;;  %v3715_v35 = vsub.f32 %v2808_v4, %v2971_v1 }
 0x1a8   : > { %2482 = vpow2.f32 %v1052_v0  ;;  %v1070_v41 = vmul.f32 1.442695, %v3714_v57  ;;  %v3716_v0 = vsub.f32 %v2811_v6, %v2967_v17 }
 0x1a9   : > { %2484 = vpow2.f32 %v1054_v37  ;;  %v1072_v36 = vmul.f32 1.442695, %v3715_v35  ;;  %v3717_v37 = vsub.f32 %v2814_v8, %v2971_v1 }
 0x1aa   : > { %2486 = vpow2.f32 %v1056_v11  ;;  %v1074_v38 = vmul.f32 1.442695, %v3716_v0  ;;  %v3718_v11 = vsub.f32 %v2817_v10, %v2967_v17  ;;  %v3722_v10 = vsub.f32 %v2829_v18, %v2967_v17 }
 0x1ab   : > { %v2469_v31 = vpop.eup %2468  ;;  %2488 = vpow2.f32 %v1058_v21  ;;  %v1076_v40 = vmul.f32 1.442695, %v3717_v37  ;;  %v3719_v21 = vsub.f32 %v2820_v12, %v2971_v1  ;;  %v3723_v12 = vsub.f32 %v2832_v20, %v2971_v1 }
 0x1ac   : > { %v2471_v27 = vpop.eup %2470  ;;  %2490 = vpow2.f32 %v1060_v29  ;;  %v1078_v43 = vmul.f32 1.442695, %v3718_v11  ;;  %v3720_v29 = vsub.f32 %v2823_v14, %v2967_v17  ;;  %v3724_v14 = vsub.f32 %v2835_v22, %v2967_v17 }
 0x1ad   : > { %v2473_v34 = vpop.eup %2472  ;;  %2492 = vpow2.f32 %v1062_v15  ;;  %v1080_v47 = vmul.f32 1.442695, %v3719_v21  ;;  %v3721_v15 = vsub.f32 %v2826_v16, %v2971_v1  ;;  %v1088_v55 = vmul.f32 1.442695, %v3723_v12 }
 0x1ae   : > { %v2475_v59 = vpop.eup %2474  ;;  %2494 = vpow2.f32 %v1064_v46  ;;  %v1082_v49 = vmul.f32 1.442695, %v3720_v29  ;;  %v1086_v46 = vmul.f32 1.442695, %v3722_v10  ;;  %v1168_v53 = vadd.f32 %v2473_v34, %v2469_v31 }
 0x1af   : > { %v2477_v61 = vpop.eup %2476  ;;  %2496 = vpow2.f32 %v1066_v44  ;;  %v1084_v51 = vmul.f32 1.442695, %v3721_v15  ;;  %v1205_v57 = vadd.f32 %v2475_v59, %v2471_v27  ;;  %v1358_v35 = vpack.c.bf16 %v2475_v59, %v2471_v27 }
 0x1b0   : > { %v2479_v63 = vpop.eup %2478  ;;  %2498 = vpow2.f32 %v1068_v33  ;;  %v1090_v33 = vmul.f32 1.442695, %v3724_v14  ;;  %v1169_v16 = vadd.f32 %v2477_v61, %v1168_v53  ;;  %v3725_v18 = vsub.f32 %v2838_v24, %v2971_v1 }
 0x1b1   : > { %v2481_v2 = vpop.eup %2480  ;;  %2500 = vpow2.f32 %v1070_v41  ;;  %v3726_v20 = vsub.f32 %v2841_v26, %v2967_v17  ;;  %1469 = vmatprep.subr.bf16.mxu0 %v1358_v35  ;;  %2334 = vmatprep.subr.bf16.mxu1 %v1358_v35  ;;  %v3727_v26 = vsub.f32 %v2844_v28, %v2971_v1  ;;  %v3729_v10 = vsub.f32 %v2850_v32, %v2971_v1 }
 0x1b2   : > { %v2483_v4 = vpop.eup %2482  ;;  %2502 = vpow2.f32 %v1072_v36  ;;  %v1357_v36 = vpack.c.bf16 %v2473_v34, %v2469_v31  ;;  %v1170_v22 = vadd.f32 %v2481_v2, %v1169_v16  ;;  %v1359_v21 = vpack.c.bf16 %v2481_v2, %v2477_v61 }
 0x1b3   : > { %v2485_v6 = vpop.eup %2484  ;;  %2504 = vpow2.f32 %v1074_v38  ;;  %v1092_v38 = vmul.f32 1.442695, %v3725_v18  ;;  %v1094_v37 = vmul.f32 1.442695, %v3726_v20  ;;  %v3728_v61 = vsub.f32 %v2847_v30, %v2967_v17 }
 0x1b4   : > { %v2487_v8 = vpop.eup %2486  ;;  %2506 = vpow2.f32 %v1076_v40  ;;  %v1206_v40 = vadd.f32 %v2479_v63, %v1205_v57  ;;  %1470 = vmatpush1.bf16.msra.mxu0 %v1357_v36  ;;  %2350 = vmatpush1.bf16.msra.mxu1 %v1357_v36  ;;  %v1171_v29 = vadd.f32 %v2485_v6, %v1170_v22  ;;  %v3732_v57 = vsub.f32 %v2859_v48, %v2967_v17 }
 0x1b5   : > { %v2489_v44 = vpop.eup %2488  ;;  %2508 = vpow2.f32 %v1078_v43  ;;  %v1360_v43 = vpack.c.bf16 %v2483_v4, %v2479_v63  ;;  %v1098_v63 = vmul.f32 1.442695, %v3728_v61  ;;  %v3733_v36 = vsub.f32 %v2862_v52, %v2971_v1 }
 0x1b6   : > { %v2491_v41 = vpop.eup %2490  ;;  %2510 = vpow2.f32 %v1080_v47  ;;  %v1207_v31 = vadd.f32 %v2483_v4, %v1206_v40  ;;  %v1361_v24 = vpack.c.bf16 %v2489_v44, %v2485_v6  ;;  %v1096_v47 = vmul.f32 1.442695, %v3727_v26 }
 0x1b7   : > { %v2493_v0 = vpop.eup %2492  ;;  %2512 = vpow2.f32 %v1082_v49  ;;  %v1362_v34 = vpack.c.bf16 %v2491_v41, %v2487_v8  ;;  %1471 = vmatprep.subr.bf16.mxu0 %v1360_v43  ;;  %2335 = vmatprep.subr.bf16.mxu1 %v1360_v43  ;;  %v1172_v28 = vadd.f32 %v2489_v44, %v1171_v29  ;;  %v3730_v6 = vsub.f32 %v2853_v42, %v2967_v17 }
 0x1b8   : > { %v2495_v11 = vpop.eup %2494  ;;  %2514 = vpow2.f32 %v1084_v51  ;;  %v1208_v2 = vadd.f32 %v2487_v8, %v1207_v31  ;;  %1472 = vmatpush1.bf16.msra.mxu0 %v1359_v21  ;;  %2351 = vmatpush1.bf16.msra.mxu1 %v1359_v21  ;;  %v3731_v8 = vsub.f32 %v2856_v45, %v2971_v1  ;;  %v1106_v42 = vmul.f32 1.442695, %v3732_v57 }
 0x1b9   : > { %v2497_v27 = vpop.eup %2496  ;;  %2516 = vpow2.f32 %v1086_v46  ;;  %v1100_v46 = vmul.f32 1.442695, %v3729_v10  ;;  %v1102_v12 = vmul.f32 1.442695, %v3730_v6  ;;  %1473 = vmatprep.subr.bf16.mxu0 %v1362_v34  ;;  %2336 = vmatprep.subr.bf16.mxu1 %v1362_v34  ;;  %v1108_v18 = vmul.f32 1.442695, %v3733_v36 }
 0x1ba   : > { %v2499_v59 = vpop.eup %2498  ;;  %2518 = vpow2.f32 %v1088_v55  ;;  %v1363_v49 = vpack.c.bf16 %v2497_v27, %v2493_v0  ;;  %v1209_v55 = vadd.f32 %v2491_v41, %v1208_v2  ;;  %v1104_v14 = vmul.f32 1.442695, %v3731_v8  ;;  %v3743_v8 = vld [vmem:[#allocation13_spill] sm:$0xff] }
 0x1bb   : > { %v2501_v15 = vpop.eup %2500  ;;  %2520 = vpow2.f32 %v1090_v33  ;;  %v1364_v4 = vpack.c.bf16 %v2499_v59, %v2495_v11  ;;  %v1173_v33 = vadd.f32 %v2493_v0, %v1172_v28  ;;  %v3734_v0 = vsub.f32 %v2865_v56, %v2967_v17 }
 0x1bc   : > { %v2503_v51 = vpop.eup %2502  ;;  %2522 = vpow2.f32 %v1092_v38  ;;  %v1210_v16 = vadd.f32 %v2495_v11, %v1209_v55  ;;  %1474 = vmatpush1.bf16.msra.mxu0 %v1361_v24  ;;  %2352 = vmatpush1.bf16.msra.mxu1 %v1361_v24  ;;  %v3735_v40 = vsub.f32 %v2868_v60, %v2971_v1  ;;  %v3736_v21 = vsub.f32 %v3673_v50, %v2967_v17 }
 0x1bd   : > { %v2505_v53 = vpop.eup %2504  ;;  %2524 = vpow2.f32 %v1094_v37  ;;  %v1174_v45 = vadd.f32 %v2497_v27, %v1173_v33  ;;  %v1110_v20 = vmul.f32 1.442695, %v3734_v0  ;;  %1475 = vmatprep.subr.bf16.mxu0 %v1364_v4  ;;  %2337 = vmatprep.subr.bf16.mxu1 %v1364_v4  ;;  %v3737_v24 = vsub.f32 %v3674_v58, %v2971_v1 }
 0x1be   : > { %v2507_v30 = vpop.eup %2506  ;;  %2526 = vpow2.f32 %v1096_v47  ;;  %v1365_v32 = vpack.c.bf16 %v2505_v53, %v2501_v15  ;;  %v1211_v37 = vadd.f32 %v2499_v59, %v1210_v16  ;;  %v1112_v11 = vmul.f32 1.442695, %v3735_v40 }
 0x1bf   : > { %v2509_v44 = vpop.eup %2508  ;;  %2528 = vpow2.f32 %v1098_v63  ;;  %v1366_v41 = vpack.c.bf16 %v2507_v30, %v2503_v51  ;;  %v1175_v22 = vadd.f32 %v2501_v15, %v1174_v45  ;;  %v1114_v56 = vmul.f32 1.442695, %v3736_v21 }
 0x1c0   : > { %v2511_v35 = vpop.eup %2510  ;;  %2530 = vpow2.f32 %v1100_v46  ;;  %v1212_v27 = vadd.f32 %v2503_v51, %v1211_v37  ;;  %v1116_v59 = vmul.f32 1.442695, %v3737_v24  ;;  %v3738_v47 = vsub.f32 %v3675_v3, %v2967_v17  ;;  %1476 = vmatpush1.bf16.msra.mxu0 %v1363_v49  ;;  %2353 = vmatpush1.bf16.msra.mxu1 %v1363_v49 }
 0x1c1   : > { %v2513_v38 = vpop.eup %2512  ;;  %2532 = vpow2.f32 %v1102_v12  ;;  %v1176_v60 = vadd.f32 %v2505_v53, %v1175_v22  ;;  %v3739_v61 = vsub.f32 %v3676_v19, %v2971_v1  ;;  %1477 = vmatprep.subr.bf16.mxu0 %v1366_v41  ;;  %2338 = vmatprep.subr.bf16.mxu1 %v1366_v41  ;;  %v3740_v51 = vsub.f32 %v3677_v23, %v2967_v17  ;;  %v3751_v22 = vld [vmem:[#allocation17_spill] sm:$0xff] }
 0x1c2   : > { %v2515_v48 = vpop.eup %2514  ;;  %2534 = vpow2.f32 %v1104_v14  ;;  %v1367_v52 = vpack.c.bf16 %v2513_v38, %v2509_v44  ;;  %v1118_v29 = vmul.f32 1.442695, %v3738_v47  ;;  %v1213_v15 = vadd.f32 %v2507_v30, %v1212_v27 }
 0x1c3   : > { %v2517_v43 = vpop.eup %2516  ;;  %2536 = vpow2.f32 %v1106_v42  ;;  %v1368_v31 = vpack.c.bf16 %v2515_v48, %v2511_v35  ;;  %v1120_v63 = vmul.f32 1.442695, %v3739_v61  ;;  %v1177_v2 = vadd.f32 %v2509_v44, %v1176_v60  ;;  %v3745_v42 = vld [vmem:[#allocation14_spill] sm:$0xff] }
 0x1c4   : > { %v2519_v34 = vpop.eup %2518  ;;  %2538 = vpow2.f32 %v1108_v18  ;;  %v1122_v3 = vmul.f32 1.442695, %v3740_v51  ;;  %v1214_v10 = vadd.f32 %v2511_v35, %v1213_v15  ;;  %v3741_v49 = vsub.f32 %v3678_v25, %v2971_v1  ;;  %1478 = vmatpush1.bf16.msra.mxu0 %v1365_v32  ;;  %2354 = vmatpush1.bf16.msra.mxu1 %v1365_v32  ;;  %v3747_v32 = vld [vmem:[#allocation15_spill] sm:$0xff] }
 0x1c5   : > { %v2521_v26 = vpop.eup %2520  ;;  %2540 = vpow2.f32 %v1110_v20  ;;  %v1178_v19 = vadd.f32 %v2513_v38, %v1177_v2  ;;  %v3742_v12 = vsub.f32 %v3679_v13, %v2967_v17  ;;  %v3744_v14 = vsub.f32 %v3743_v8, %v2971_v1  ;;  %1479 = vmatprep.subr.bf16.mxu0 %v1368_v31  ;;  %2339 = vmatprep.subr.bf16.mxu1 %v1368_v31  ;;  %v3749_v20 = vld [vmem:[#allocation16_spill] sm:$0xff] }
 0x1c6   : > { %v2523_v50 = vpop.eup %2522  ;;  %2542 = vpow2.f32 %v1112_v11  ;;  %v1369_v58 = vpack.c.bf16 %v2521_v26, %v2517_v43  ;;  %v1124_v53 = vmul.f32 1.442695, %v3741_v49  ;;  %v1215_v30 = vadd.f32 %v2515_v48, %v1214_v10  ;;  %v3759_v10 = vld [vmem:[#allocation21_spill] sm:$0xff] }
 0x1c7   : > { %v2525_v4 = vpop.eup %2524  ;;  %2544 = vpow2.f32 %v1114_v56  ;;  %v1370_v46 = vpack.c.bf16 %v2523_v50, %v2519_v34  ;;  %v1126_v55 = vmul.f32 1.442695, %v3742_v12  ;;  %v1128_v33 = vmul.f32 1.442695, %v3744_v14 }
 0x1c8   : > { %v2527_v28 = vpop.eup %2526  ;;  %2546 = vpow2.f32 %v1116_v59  ;;  %v1179_v44 = vadd.f32 %v2517_v43, %v1178_v19  ;;  %v3746_v16 = vsub.f32 %v3745_v42, %v2967_v17  ;;  %v1216_v41 = vadd.f32 %v2519_v34, %v1215_v30  ;;  %1480 = vmatpush1.bf16.msra.mxu0 %v1367_v52  ;;  %2355 = vmatpush1.bf16.msra.mxu1 %v1367_v52  ;;  %v3753_v34 = vld [vmem:[#allocation18_spill] sm:$0xff]  ;;  %v3755_v52 = vld [vmem:[#allocation19_spill] sm:$0xff] }
 0x1c9   : > { %v2529_v6 = vpop.eup %2528  ;;  %2548 = vpow2.f32 %v1118_v29  ;;  %v3748_v18 = vsub.f32 %v3747_v32, %v2971_v1  ;;  %v3750_v37 = vsub.f32 %v3749_v20, %v2967_v17  ;;  %v3752_v43 = vsub.f32 %v3751_v22, %v2971_v1  ;;  %1481 = vmatprep.subr.bf16.mxu0 %v1370_v46  ;;  %2340 = vmatprep.subr.bf16.mxu1 %v1370_v46 }
 0x1ca   : > { %v2531_v23 = vpop.eup %2530  ;;  %2550 = vpow2.f32 %v1120_v63  ;;  %v1371_v25 = vpack.c.bf16 %v2529_v6, %v2525_v4  ;;  %v1130_v13 = vmul.f32 1.442695, %v3746_v16  ;;  %v1180_v38 = vadd.f32 %v2521_v26, %v1179_v44  ;;  %v3757_v63 = vld [vmem:[#allocation20_spill] sm:$0xff] }
 0x1cb   : > { %v2533_v57 = vpop.eup %2532  ;;  %2552 = vpow2.f32 %v1122_v3  ;;  %v1372_v35 = vpack.c.bf16 %v2531_v23, %v2527_v28  ;;  %v1132_v45 = vmul.f32 1.442695, %v3748_v18  ;;  %v1134_v48 = vmul.f32 1.442695, %v3750_v37 }
 0x1cc   : > { %v2535_v36 = vpop.eup %2534  ;;  %2554 = vpow2.f32 %v1124_v53  ;;  %v1217_v40 = vadd.f32 %v2523_v50, %v1216_v41  ;;  %v1136_v21 = vmul.f32 1.442695, %v3752_v43  ;;  %v1181_v56 = vadd.f32 %v2525_v4, %v1180_v38  ;;  %1482 = vmatpush1.bf16.msra.mxu0 %v1369_v58  ;;  %2356 = vmatpush1.bf16.msra.mxu1 %v1369_v58  ;;  %v3765_v41 = vld [vmem:[#allocation25_spill] sm:$0xff] }
 0x1cd   : > { %v2537_v0 = vpop.eup %2536  ;;  %2556 = vpow2.f32 %v1126_v55  ;;  %v3754_v24 = vsub.f32 %v3753_v34, %v2967_v17  ;;  %v3756_v29 = vsub.f32 %v3755_v52, %v2971_v1  ;;  %v3758_v2 = vsub.f32 %v3757_v63, %v2967_v17  ;;  %1483 = vmatprep.subr.bf16.mxu0 %v1372_v35  ;;  %2341 = vmatprep.subr.bf16.mxu1 %v1372_v35 }
 0x1ce   : > { %v2539_v11 = vpop.eup %2538  ;;  %2558 = vpow2.f32 %v1128_v33  ;;  %v1373_v27 = vpack.c.bf16 %v2537_v0, %v2533_v57  ;;  %v1218_v60 = vadd.f32 %v2527_v28, %v1217_v40  ;;  %v1182_v50 = vadd.f32 %v2529_v6, %v1181_v56  ;;  %v3761_v6 = vld [vmem:[#allocation22_spill] sm:$0xff] }
 0x1cf   : > { %v2541_v31 = vpop.eup %2540  ;;  %2560 = vpow2.f32 %v1130_v13  ;;  %v1138_v59 = vmul.f32 1.442695, %v3754_v24  ;;  %v1374_v26 = vpack.c.bf16 %v2539_v11, %v2535_v36  ;;  %v1140_v15 = vmul.f32 1.442695, %v3756_v29 }
 0x1d0   : > { %v2543_v47 = vpop.eup %2542  ;;  %2562 = vpow2.f32 %v1132_v45  ;;  %v1142_v4 = vmul.f32 1.442695, %v3758_v2  ;;  %v1219_v51 = vadd.f32 %v2531_v23, %v1218_v60  ;;  %v3760_v46 = vsub.f32 %v3759_v10, %v2971_v1  ;;  %1484 = vmatpush1.bf16.msra.mxu0 %v1371_v25  ;;  %2357 = vmatpush1.bf16.msra.mxu1 %v1371_v25  ;;  %v3768_v25 = vld [vmem:[#allocation27_spill] sm:$0xff] }
 0x1d1   : > { %v2545_v61 = vpop.eup %2544  ;;  %2564 = vpow2.f32 %v1134_v48  ;;  %v1183_v49 = vadd.f32 %v2533_v57, %v1182_v50  ;;  %v3762_v12 = vsub.f32 %v3761_v6, %v2967_v17  ;;  %v3763_v58 = vsub.f32 %v3690_v9, %v2971_v1  ;;  %1485 = vmatprep.subr.bf16.mxu0 %v1374_v26  ;;  %2342 = vmatprep.subr.bf16.mxu1 %v1374_v26 }
 0x1d2   : > { %v2547_v3 = vpop.eup %2546  ;;  %2566 = vpow2.f32 %v1136_v21  ;;  %v1144_v28 = vmul.f32 1.442695, %v3760_v46  ;;  %v1375_v53 = vpack.c.bf16 %v2545_v61, %v2541_v31  ;;  %v1220_v30 = vadd.f32 %v2535_v36, %v1219_v51 }
 0x1d3   : > { %v2549_v19 = vpop.eup %2548  ;;  %2568 = vpow2.f32 %v1138_v59  ;;  %v1146_v55 = vmul.f32 1.442695, %v3762_v12  ;;  %v1376_v23 = vpack.c.bf16 %v2547_v3, %v2543_v47  ;;  %v1148_v14 = vmul.f32 1.442695, %v3763_v58 }
 0x1d4   : > { %v2551_v8 = vpop.eup %2550  ;;  %2570 = vpow2.f32 %v1140_v15  ;;  %v1184_v33 = vadd.f32 %v2537_v0, %v1183_v49  ;;  %v3764_v57 = vsub.f32 %v3691_v5, %v2967_v17  ;;  %v1221_v16 = vadd.f32 %v2539_v11, %v1220_v30  ;;  %1486 = vmatpush1.bf16.msra.mxu0 %v1373_v27  ;;  %2358 = vmatpush1.bf16.msra.mxu1 %v1373_v27  ;;  %v3773_v27 = vld [vmem:[#allocation31_spill] sm:$0xff] }
 0x1d5   : > { %v2553_v44 = vpop.eup %2552  ;;  %2572 = vpow2.f32 %v1142_v4  ;;  %v3766_v35 = vsub.f32 %v3765_v41, %v2971_v1  ;;  %v3767_v45 = vsub.f32 %v3693_v39, %v2967_v17  ;;  %v3769_v37 = vsub.f32 %v3768_v25, %v2971_v1  ;;  %1487 = vmatprep.subr.bf16.mxu0 %v1376_v23  ;;  %2343 = vmatprep.subr.bf16.mxu1 %v1376_v23 }
 0x1d6   : > { %v1150_v42 = vmul.f32 1.442695, %v3764_v57  ;;  %v2555_v13 = vpop.eup %2554  ;;  %2574 = vpow2.f32 %v1144_v28  ;;  %v1185_v32 = vadd.f32 %v2541_v31, %v1184_v33  ;;  %v1377_v9 = vpack.c.bf16 %v2553_v44, %v2549_v19 }
 0x1d7   : > { %v1152_v36 = vmul.f32 1.442695, %v3766_v35  ;;  %v2557_v18 = vpop.eup %2556  ;;  %2576 = vpow2.f32 %v1146_v55  ;;  %v1154_v5 = vmul.f32 1.442695, %v3767_v45  ;;  %v1222_v38 = vadd.f32 %v2543_v47, %v1221_v16 }
 0x1d8   : > { %v1378_v0 = vpack.c.bf16 %v2555_v13, %v2551_v8  ;;  %v2559_v20 = vpop.eup %2558  ;;  %2578 = vpow2.f32 %v1148_v14  ;;  %v1156_v48 = vmul.f32 1.442695, %v3769_v37  ;;  %v1186_v40 = vadd.f32 %v2545_v61, %v1185_v32  ;;  %1488 = vmatpush1.bf16.msra.mxu0 %v1375_v53  ;;  %2359 = vmatpush1.bf16.msra.mxu1 %v1375_v53 }
 0x1d9   : > { %v2561_v11 = vpop.eup %2560  ;;  %2580 = vpow2.f32 %v1150_v42  ;;  %v3770_v22 = vsub.f32 %v3695_v7, %v2967_v17  ;;  %v1223_v21 = vadd.f32 %v2547_v3, %v1222_v38  ;;  %v3771_v56 = vsub.f32 %v3696_v62, %v2971_v1 }
 0x1da   : > { %v2563_v39 = vpop.eup %2562  ;;  %2582 = vpow2.f32 %v1152_v36  ;;  %v1187_v34 = vadd.f32 %v2549_v19, %v1186_v40  ;;  %v1379_v24 = vpack.c.bf16 %v2561_v11, %v2557_v18  ;;  %v3772_v60 = vsub.f32 %v3697_v54, %v2967_v17  ;;  %1489 = vmatprep.subr.bf16.mxu0 %v1378_v0  ;;  %2344 = vmatprep.subr.bf16.mxu1 %v1378_v0  ;;  %v3776_v40 = vld [vmem:[#allocation36_spill] sm:$0xff] }
 0x1db   : > { %v1158_v43 = vmul.f32 1.442695, %v3770_v22  ;;  %v1160_v31 = vmul.f32 1.442695, %v3771_v56  ;;  %v2565_v59 = vpop.eup %2564  ;;  %2584 = vpow2.f32 %v1154_v5  ;;  %v1224_v26 = vadd.f32 %v2551_v8, %v1223_v21  ;;  %v2436_v56 = vld [vmem:[%s3072_s10] ss:$8 sps:$4 sm:$0xff]  }
 0x1dc   : > { %v1162_v7 = vmul.f32 1.442695, %v3772_v60  ;;  %v1380_v47 = vpack.c.bf16 %v2563_v39, %v2559_v20  ;;  %v2567_v52 = vpop.eup %2566  ;;  %2586 = vpow2.f32 %v1156_v48  ;;  %v3774_v29 = vsub.f32 %v3773_v27, %v2971_v1  ;;  %1490 = vmatpush1.bf16.msra.mxu0 %v1377_v9  ;;  %2360 = vmatpush1.bf16.msra.mxu1 %v1377_v9  ;;  %v3775_v48 = vld [vmem:[#allocation33_spill] sm:$0xff] }
 0x1dd   : > { %v1188_v62 = vadd.f32 %v2553_v44, %v1187_v34  ;;  %v2569_v50 = vpop.eup %2568  ;;  %2588 = vpow2.f32 %v1158_v43  ;;  %v1225_v61 = vadd.f32 %v2555_v13, %v1224_v26 }
 0x1de   : > { %v1164_v15 = vmul.f32 1.442695, %v3774_v29  ;;  %v2571_v63 = vpop.eup %2570  ;;  %2590 = vpow2.f32 %v1160_v31  ;;  %v1381_v17 = vpack.c.bf16 %v2569_v50, %v2565_v59  ;;  %1491 = vmatprep.subr.bf16.mxu0 %v1380_v47  ;;  %2345 = vmatprep.subr.bf16.mxu1 %v1380_v47  ;;  %v2439_v31 = vld [vmem:[%s3072_s10 + $0x20] ss:$8 sps:$4 sm:$0xff]  }
 0x1df   : > { %v1189_v2 = vadd.f32 %v2557_v18, %v1188_v62  ;;  %v2573_v54 = vpop.eup %2572  ;;  %2592 = vpow2.f32 %v1162_v7  ;;  %v1226_v4 = vadd.f32 %v2559_v20, %v1225_v61  ;;  %v1382_v51 = vpack.c.bf16 %v2571_v63, %v2567_v52  ;;  %v2447_v62 = vld [vmem:[%s3072_s10 + $0x30] ss:$8 sps:$4 sm:$0xff]   ;;  %v2448_v61 = vld [vmem:[%s3072_s10 + $0x44] ss:$8 sps:$4 sm:$0xff]  }
 0x1e0   : > { %v2575_v3 = vpop.eup %2574  ;;  %2594 = vpow2.f32 %v1164_v15  ;;  %1492 = vmatpush1.bf16.msra.mxu0 %v1379_v24  ;;  %2361 = vmatpush1.bf16.msra.mxu1 %v1379_v24  ;;  %v2442_v24 = vld [vmem:[%s3072_s10 + $0x14] ss:$8 sps:$4 sm:$0xff]   ;;  %v2446_v15 = vld [vmem:[%s3072_s10 + $0x10] ss:$8 sps:$4 sm:$0xff]  }
 0x1e1   : > { %v1190_v1 = vadd.f32 %v2561_v11, %v1189_v2  ;;  %v2577_v10 = vpop.eup %2576  ;;  %v1227_v46 = vadd.f32 %v2563_v39, %v1226_v4  ;;  %1493 = vmatprep.subr.bf16.mxu0 %v1382_v51  ;;  %2346 = vmatprep.subr.bf16.mxu1 %v1382_v51  ;;  %v3777_v11 = vsub.f32 %v3775_v48, %v3776_v40  ;;  %v1769_v40 = vld [vmem:[%s3573_s5 + $0x50] sm:$0xff] }
 0x1e2   : > { %v2579_v28 = vpop.eup %2578  ;;  %v1383_v53 = vpack.c.bf16 %v2577_v10, %v2573_v54 }
 0x1e3   : > { %v1191_v49 = vadd.f32 %v2565_v59, %v1190_v1  ;;  %v2581_v19 = vpop.eup %2580  ;;  %v1228_v6 = vadd.f32 %v2567_v52, %v1227_v46  ;;  %v1384_v12 = vpack.c.bf16 %v2579_v28, %v2575_v3  ;;  %v961_v22 = vmul.f32 1.442695, %v3777_v11  ;;  %v2444_v59 = vld [vmem:[%s3072_s10 + $0x34] ss:$8 sps:$4 sm:$0xff]   ;;  %v2450_v1 = vld [vmem:[%s3072_s10 + $0x40] ss:$8 sps:$4 sm:$0xff]  }
 0x1e4   : > { %v2583_v55 = vpop.eup %2582  ;;  %1494 = vmatpush1.bf16.msra.mxu0 %v1381_v17  ;;  %2362 = vmatpush1.bf16.msra.mxu1 %v1381_v17  ;;  %v1166_v17 = vld [vmem:[#allocation3] sm:$0x3]  ;;  %v2451_v46 = vld [vmem:[%s3072_s10 + $0x54] ss:$8 sps:$4 sm:$0xff]  }
 0x1e5   : > { %v1192_v30 = vadd.f32 %v2569_v50, %v1191_v49  ;;  %v2585_v23 = vpop.eup %2584  ;;  %v1229_v8 = vadd.f32 %v2571_v63, %v1228_v6  ;;  %1495 = vmatprep.subr.bf16.mxu0 %v1384_v12  ;;  %2347 = vmatprep.subr.bf16.mxu1 %v1384_v12  ;;  %2596 = vpow2.f32 %v961_v22  ;;  %v2453_v49 = vld [vmem:[%s3072_s10 + $0x50] ss:$8 sps:$4 sm:$0xff]   ;;  %v2457_v6 = vld [vmem:[%s3072_s10 + $0x74] ss:$8 sps:$4 sm:$0xff]  }
 0x1e6   : > { %v2587_v58 = vpop.eup %2586  ;;  %v1385_v33 = vpack.c.bf16 %v2585_v23, %v2581_v19  ;;  %v2459_v12 = vld [vmem:[%s3072_s10 + $0x70] ss:$8 sps:$4 sm:$0xff]  }
 0x1e7   : > { %v1193_v14 = vadd.f32 %v2573_v54, %v1192_v30  ;;  %v2589_v44 = vpop.eup %2588  ;;  %v1230_v57 = vadd.f32 %v2575_v3, %v1229_v8  ;;  %v1386_v42 = vpack.c.bf16 %v2587_v58, %v2583_v55  ;;  %v3778_v54 = vld [vmem:[#allocation32_spill] sm:$0xff]  ;;  %v1760_v8 = vld [vmem:[%s3573_s5 + $0x8] sm:$0xff] }
 0x1e8   : > { %v2591_v16 = vpop.eup %2590  ;;  %1496 = vmatpush1.bf16.msra.mxu0 %v1383_v53  ;;  %2363 = vmatpush1.bf16.msra.mxu1 %v1383_v53  ;;  %v2454_v53 = vld [vmem:[%s3072_s10 + $0x64] ss:$8 sps:$4 sm:$0xff]  }
 0x1e9   : > { %v1194_v13 = vadd.f32 %v2577_v10, %v1193_v14  ;;  %v2593_v41 = vpop.eup %2592  ;;  %v1231_v35 = vadd.f32 %v2579_v28, %v1230_v57  ;;  %1497 = vmatprep.subr.bf16.mxu0 %v1386_v42  ;;  %2348 = vmatprep.subr.bf16.mxu1 %v1386_v42  ;;  %v1759_v30 = vld [vmem:[%s3573_s5] sm:$0xff]  ;;  %v1766_v57 = vld [vmem:[%s3573_s5 + $0x38] sm:$0xff]  ;;  %v1765_v42 = vld [vmem:[%s3573_s5 + $0x30] sm:$0xff] }
 0x1ea   : > { %v2595_v36 = vpop.eup %2594  ;;  %v1387_v9 = vpack.c.bf16 %v2593_v41, %v2589_v44  ;;  %1777 = vperm.xlu0 %2394, %v1759_v30   ;;  %v1773_v30 = vld [vmem:[%s3573_s5 + $0x70] sm:$0xff] }
 0x1eb   : > { %v1195_v32 = vadd.f32 %v2581_v19, %v1194_v13  ;;  %v1232_v18 = vadd.f32 %v2583_v55, %v1231_v35  ;;  %v1388_v45 = vpack.c.bf16 %v2595_v36, %v2591_v16  ;;  %v2456_v19 = vld [vmem:[%s3072_s10 + $0x60] ss:$8 sps:$4 sm:$0xff]   ;;  %v3780_v55 = vmov 0  }
 0x1ec   : > { %1498 = vmatpush1.bf16.msra.mxu0 %v1385_v33  ;;  %2364 = vmatpush1.bf16.msra.mxu1 %v1385_v33  ;;  %v1764_v33 = vld [vmem:[%s3573_s5 + $0x28] sm:$0xff] }
 0x1ed   : > { %v1196_v5 = vadd.f32 %v2585_v23, %v1195_v32  ;;  %v1233_v38 = vadd.f32 %v2587_v58, %v1232_v18  ;;  %1499 = vmatprep.subr.bf16.mxu0 %v1388_v45  ;;  %2349 = vmatprep.subr.bf16.mxu1 %v1388_v45  ;;  %v1761_v23 = vld [vmem:[%s3573_s5 + $0x10] sm:$0xff]  ;;  %v1762_v58 = vld [vmem:[%s3573_s5 + $0x18] sm:$0xff]  ;;  %v1767_v32 = vld [vmem:[%s3573_s5 + $0x40] sm:$0xff] }
 0x1ee   : > { %1787 = vperm.xlu1 %2395, %v1761_v23   ;;  %1782 = vperm.xlu0 %2394, %v1760_v8  }
 0x1ef   : > { %v1197_v0 = vadd.f32 %v2589_v44, %v1196_v5  ;;  %v1234_v20 = vadd.f32 %v2591_v16, %v1233_v38  ;;  %v2597_v2 = vpop.eup %2596  ;;  %v1763_v44 = vld [vmem:[%s3573_s5 + $0x20] sm:$0xff]  ;;  %v3781_v16 = vld [vmem:[#allocation34_spill] sm:$0xff] }
 0x1f0   : > { %1500 = vmatpush1.bf16.msra.mxu0 %v1387_v9  ;;  %2365 = vmatpush1.bf16.msra.mxu1 %v1387_v9  ;;  %v1167_v51 = vmul.f32 %v2597_v2, %v1166_v17  ;;  %v1302_v13 = vrot.slane %v2597_v2, %v3781_v16 }
 0x1f1   : > { %v1198_v25 = vadd.f32 %v2593_v41, %v1197_v0  ;;  %v1235_v37 = vadd.f32 %v2595_v36, %v1234_v20  ;;  %v3782_v41 = vld [vmem:[#allocation35_spill] sm:$0xff]  ;;  %v1768_v36 = vld [vmem:[%s3573_s5 + $0x48] sm:$0xff] }
 0x1f2   : > { %1792 = vperm.xlu1 %2395, %v1762_v58   ;;  %1797 = vperm.xlu0 %2394, %v1763_v44   ;;  %v1306_v35 = vrot.slane %v2597_v2, %v3782_v41  ;;  %v3358_v9 = vmul.f32 0.0, %v1302_v13  ;;  %v1770_v0 = vld [vmem:[%s3573_s5 + $0x58] sm:$0xff] }
 0x1f3   : > { %v1199_v43 = vrot.slane %v1198_v25, 4  ;;  %v1236_v21 = vrot.slane %v1235_v37, 4  ;;  %1502 = vmatmul.mubr.bf16.vlgmr.msra.gmra.mrb[64].mxu0 %v2436_v56  ;;  %1522 = vmatmul.mubr.bf16.vlgmr.msra.gmra.mrb[0].mxu1 %v2439_v31 }
 0x1f4   : > { %1511 = vmatprep.mubr.bf16.mxu0 %v2442_v24  ;;  %1531 = vmatprep.mubr.bf16.mxu1 %v2444_v59  ;;  %v3360_v45 = vmul.f32 0.0, %v1306_v35 }
 0x1f5   : > { %v1200_v39 = vadd.f32 %v1199_v43, %v1198_v25  ;;  %v1237_v34 = vadd.f32 %v1236_v21, %v1235_v37 }
 0x1f6   : > { %1802 = vperm.xlu1 %2395, %v1764_v33   ;;  %1807 = vperm.xlu0 %2394, %v1765_v42  }
 0x1f7   : > { %v1201_v60 = vrot.slane %v1200_v39, 2  ;;  %v1238_v7 = vrot.slane %v1237_v34, 2 }
 0x1f9   : > { %v1202_v26 = vadd.f32 %v1201_v60, %v1200_v39  ;;  %v1239_v47 = vadd.f32 %v1238_v7, %v1237_v34 }
 0x1fa   : > { %1812 = vperm.xlu1 %2395, %v1766_v57   ;;  %1817 = vperm.xlu0 %2394, %v1767_v32  }
 0x1fb   : > { %v1203_v52 = vrot.slane %v1202_v26, 1  ;;  %v1240_v27 = vrot.slane %v1239_v47, 1  ;;  %1512 = vmatmul.mubr.bf16.gmra.mrb[68].mxu0 %v2446_v15  ;;  %1532 = vmatmul.mubr.bf16.gmra.mrb[4].mxu1 %v2447_v62  ;;  %v1771_v15 = vld [vmem:[%s3573_s5 + $0x60] sm:$0xff] }
 0x1fc   : > { %1541 = vmatprep.mubr.bf16.mxu1 %v2448_v61 }
 0x1fd   : > { %v1204_v29 = vadd.f32 %v1203_v52, %v1202_v26  ;;  %v1241_v50 = vadd.f32 %v1240_v27, %v1239_v47  ;;  %v1772_v26 = vld [vmem:[%s3573_s5 + $0x68] sm:$0xff] }
 0x1fe   : > { %1822 = vperm.xlu1 %2395, %v1768_v36   ;;  %1827 = vperm.xlu0 %2394, %v1769_v40  }
 0x1ff   : > { %v1244_v63 = vcombine.low %v1204_v29, %v1241_v50 }
 0x201   : > { %v1251_v4 = vrot.slane %v1244_v63, %v3778_v54 }
 0x202   : > { %1832 = vperm.xlu1 %2395, %v1770_v0   ;;  %1837 = vperm.xlu0 %2394, %v1771_v15  }
 0x203   : > { %v1258_v3 = vrot.slane %v1251_v4, %v3778_v54  ;;  %1542 = vmatmul.mubr.bf16.gmra.mrb[8].mxu1 %v2450_v1 }
 0x204   : > { %1551 = vmatprep.mubr.bf16.mxu1 %v2451_v46 }
 0x205   : > { %v1260_v10 = vadd.f32 %v1258_v3, %v1167_v51 }
 0x206   : > { %1842 = vperm.xlu1 %2395, %v1772_v26   ;;  %1847 = vperm.xlu0 %2394, %v1773_v30  }
 0x207   : > { %1265 = vst.msk [vmem:[#allocation3] sm:$0x3] %vm2763_vm0, %v1260_v10 }
 0x20b   : > { %1552 = vmatmul.mubr.bf16.gmra.mrb[12].mxu1 %v2453_v49  ;;  %v1774_v49 = vld [vmem:[%s3573_s5 + $0x78] sm:$0xff] }
 0x20c   : > { %1561 = vmatprep.mubr.bf16.mxu1 %v2454_v53  ;;  %1852 = vperm.xlu1 %2395, %v1774_v49  }
 0x20e   : > { %v1682_v14 = vld [vmem:[#allocation3] sm:$0x3] }
 0x20f   : > { %2598 = vrcp.f32 %v1682_v14 }
 0x213   : > { %1562 = vmatmul.mubr.bf16.gmra.mrb[16].mxu1 %v2456_v19 }
 0x214   : > { %1571 = vmatprep.mubr.bf16.mxu1 %v2457_v6 }
 0x219   : > { %v2599_v18 = vpop.eup %2598 }
 0x21a   : > { %v3373_v39 = vrot.slane %v2599_v18, %v3781_v16  ;;  %v3378_v59 = vrot.slane %v2599_v18, %v3782_v41 }
 0x21b   : > { %1572 = vmatmul.mubr.bf16.gmra.mrb[20].mxu1 %v2459_v12 }
 0x21c   : > { %1935 = vmatprep.mubr.bf16.mxu1 %v3780_v55 }
 0x2c6   : > { %v1503_v5 = vpop.f32.mrb[64].mxu0  ;;  %v1523_v38 = vpop.f32.mrb[0].mxu1 }
 0x2c7   : > { %v1582_v20 = vadd.f32 %v1503_v5, %v3358_v9  ;;  %v1590_v25 = vadd.f32 %v1523_v38, %v3358_v9  ;;  %v1505_v37 = vpop.f32.mrb[65].mxu0  ;;  %v1525_v48 = vpop.f32.mrb[1].mxu1 }
 0x2c8   : > { %v1583_v11 = vadd.f32 %v1505_v37, %v3360_v45  ;;  %v1591_v22 = vadd.f32 %v1525_v48, %v3360_v45  ;;  %v1507_v43 = vpop.f32.mrb[66].mxu0  ;;  %v1527_v21 = vpop.f32.mrb[2].mxu1 }
 0x2c9   : > { %v1584_v56 = vadd.f32 %v1507_v43, %v3358_v9  ;;  %v1592_v31 = vadd.f32 %v1527_v21, %v3358_v9  ;;  %v1509_v34 = vpop.f32.mrb[67].mxu0  ;;  %v1529_v24 = vpop.f32.mrb[3].mxu1  ;;  %v1695_v47 = vmul.f32 %v3373_v39, %v1582_v20  ;;  %v3387_v52 = vmul.f32 %v3373_v39, %v1590_v25 }
 0x2ca   : > { %v1585_v60 = vadd.f32 %v1509_v34, %v3360_v45  ;;  %v1593_v7 = vadd.f32 %v1529_v24, %v3360_v45  ;;  %v1696_v62 = vmul.f32 %v3378_v59, %v1583_v11  ;;  %v1704_v50 = vmul.f32 %v3378_v59, %v1591_v22 }
 0x2cb   : > { %v1697_v27 = vmul.f32 %v3373_v39, %v1584_v56  ;;  %v1705_v29 = vmul.f32 %v3373_v39, %v1592_v31 }
 0x2cc   : > { %v1698_v61 = vmul.f32 %v3378_v59, %v1585_v60  ;;  %v1706_v63 = vmul.f32 %v3378_v59, %v1593_v7 }
 0x2cd   : > { %v1743_v2 = vpack.c.bf16 %v1697_v27, %v1695_v47  ;;  %v1747_v17 = vpack.c.bf16 %v1705_v29, %v3387_v52 }
 0x2ce   : > { %v1513_v54 = vpop.f32.mrb[68].mxu0  ;;  %v1533_v4 = vpop.f32.mrb[4].mxu1  ;;  %v1744_v51 = vpack.c.bf16 %v1698_v61, %v1696_v62  ;;  %v1748_v3 = vpack.c.bf16 %v1706_v63, %v1704_v50 }
 0x2cf   : > { %v1586_v1 = vadd.f32 %v1513_v54, %v3358_v9  ;;  %v1594_v10 = vadd.f32 %v1533_v4, %v3358_v9  ;;  %v1515_v46 = vpop.f32.mrb[69].mxu0  ;;  %v1535_v28 = vpop.f32.mrb[5].mxu1 }
 0x2d0   : > { %v1587_v53 = vadd.f32 %v1515_v46, %v3360_v45  ;;  %v1595_v19 = vadd.f32 %v1535_v28, %v3360_v45  ;;  %v1517_v6 = vpop.f32.mrb[70].mxu0  ;;  %v1537_v12 = vpop.f32.mrb[6].mxu1  ;;  %1903 = vmatprep.subr.bf16.mxu1 %v1744_v51 }
 0x2d1   : > { %v1588_v23 = vadd.f32 %v1517_v6, %v3358_v9  ;;  %v1596_v8 = vadd.f32 %v1537_v12, %v3358_v9  ;;  %v1519_v58 = vpop.f32.mrb[71].mxu0  ;;  %v1539_v14 = vpop.f32.mrb[7].mxu1  ;;  %1904 = vmatpush1.bf16.msra.mxu1 %v1743_v2  ;;  %v1699_v57 = vmul.f32 %v3373_v39, %v1586_v1  ;;  %v1707_v42 = vmul.f32 %v3373_v39, %v1594_v10 }
 0x2d2   : > { %v1589_v33 = vadd.f32 %v1519_v58, %v3360_v45  ;;  %v1597_v44 = vadd.f32 %v1539_v14, %v3360_v45  ;;  %v1700_v41 = vmul.f32 %v3378_v59, %v1587_v53  ;;  %v1708_v35 = vmul.f32 %v3378_v59, %v1595_v19 }
 0x2d3   : > { %v1701_v16 = vmul.f32 %v3373_v39, %v1588_v23  ;;  %v1709_v13 = vmul.f32 %v3373_v39, %v1596_v8 }
 0x2d4   : > { %v1702_v36 = vmul.f32 %v3378_v59, %v1589_v33  ;;  %v1710_v32 = vmul.f32 %v3378_v59, %v1597_v44 }
 0x2d5   : > { %v1745_v18 = vpack.c.bf16 %v1701_v16, %v1699_v57  ;;  %v1749_v5 = vpack.c.bf16 %v1709_v13, %v1707_v42 }
 0x2d6   : > { %v1543_v38 = vpop.f32.mrb[8].mxu1  ;;  %v1746_v0 = vpack.c.bf16 %v1702_v36, %v1700_v41  ;;  %v1750_v20 = vpack.c.bf16 %v1710_v32, %v1708_v35 }
 0x2d7   : > { %v1598_v25 = vadd.f32 %v1543_v38, %v3358_v9  ;;  %v1545_v37 = vpop.f32.mrb[9].mxu1  ;;  %v2465_v38 = vld [vmem:[%s3572_s4 + $0x28] sm:$0xff]  }
 0x2d8   : > { %v1599_v48 = vadd.f32 %v1545_v37, %v3360_v45  ;;  %v1547_v40 = vpop.f32.mrb[10].mxu1  ;;  %1905 = vmatprep.subr.bf16.mxu1 %v1746_v0  ;;  %v2466_v0 = vld [vmem:[%s3572_s4 + $0x30] sm:$0xff]  }
 0x2d9   : > { %v1600_v11 = vadd.f32 %v1547_v40, %v3358_v9  ;;  %v1549_v22 = vpop.f32.mrb[11].mxu1  ;;  %1906 = vmatpush1.bf16.msra.mxu1 %v1745_v18  ;;  %v1711_v21 = vmul.f32 %v3373_v39, %v1598_v25  ;;  %v1778_v25 = vpop.permute.xlu0 %1777 }
 0x2da   : > { %v1601_v43 = vadd.f32 %v1549_v22, %v3360_v45  ;;  %1907 = vmatprep.subr.bf16.mxu1 %v1748_v3  ;;  %v1712_v31 = vmul.f32 %v3378_v59, %v1599_v48  ;;  %v2016_v48 = vld [vmem:[%s3488_s26] sm:$0xff]  ;;  %v2017_v22 = vld [vmem:[%s3488_s26 + $0x8] sm:$0xff] }
 0x2db   : > { %v1713_v56 = vmul.f32 %v3373_v39, %v1600_v11 }
 0x2dc   : > { %v1714_v34 = vmul.f32 %v3378_v59, %v1601_v43 }
 0x2dd   : > { %v1751_v24 = vpack.c.bf16 %v1713_v56, %v1711_v21  ;;  %1908 = vmatpush1.bf16.msra.mxu1 %v1747_v17  ;;  %v1783_v40 = vpop.permute.xlu0 %1782  ;;  %v2018_v56 = vld [vmem:[%s3488_s26 + $0x10] sm:$0xff] }
 0x2de   : > { %v1553_v60 = vpop.f32.mrb[12].mxu1  ;;  %1909 = vmatprep.subr.bf16.mxu1 %v1750_v20  ;;  %v1752_v7 = vpack.c.bf16 %v1714_v34, %v1712_v31  ;;  %v2467_v20 = vld [vmem:[%s3572_s4 + $0x38] sm:$0xff]  }
 0x2df   : > { %v1602_v26 = vadd.f32 %v1553_v60, %v3358_v9  ;;  %v1555_v47 = vpop.f32.mrb[13].mxu1  ;;  %v2019_v60 = vld [vmem:[%s3488_s26 + $0x18] sm:$0xff] }
 0x2e0   : > { %v1603_v52 = vadd.f32 %v1555_v47, %v3360_v45  ;;  %v1557_v27 = vpop.f32.mrb[14].mxu1  ;;  %v1788_v47 = vpop.permute.xlu1 %1787 }
 0x2e1   : > { %v1604_v29 = vadd.f32 %v1557_v27, %v3358_v9  ;;  %v1559_v15 = vpop.f32.mrb[15].mxu1  ;;  %1910 = vmatpush1.bf16.msra.mxu1 %v1749_v5  ;;  %v1715_v50 = vmul.f32 %v3373_v39, %v1602_v26  ;;  %v2460_v5 = vld [vmem:[%s3572_s4] sm:$0xff]  }
 0x2e2   : > { %v1605_v62 = vadd.f32 %v1559_v15, %v3360_v45  ;;  %1911 = vmatprep.subr.bf16.mxu1 %v1752_v7  ;;  %v1716_v63 = vmul.f32 %v3378_v59, %v1603_v52  ;;  %v2020_v15 = vld [vmem:[%s3488_s26 + $0x20] sm:$0xff] }
 0x2e3   : > { %v1717_v61 = vmul.f32 %v3373_v39, %v1604_v29 }
 0x2e4   : > { %v1718_v2 = vmul.f32 %v3378_v59, %v1605_v62 }
 0x2e5   : > { %v1753_v17 = vpack.c.bf16 %v1717_v61, %v1715_v50  ;;  %1912 = vmatpush1.bf16.msra.mxu1 %v1751_v24  ;;  %v2021_v61 = vld [vmem:[%s3488_s26 + $0x28] sm:$0xff] }
 0x2e6   : > { %v1563_v54 = vpop.f32.mrb[16].mxu1  ;;  %v1754_v4 = vpack.c.bf16 %v1718_v2, %v1716_v63 }
 0x2e7   : > { %v1606_v51 = vadd.f32 %v1563_v54, %v3358_v9  ;;  %v1565_v3 = vpop.f32.mrb[17].mxu1  ;;  %v2022_v54 = vld [vmem:[%s3488_s26 + $0x30] sm:$0xff] }
 0x2e8   : > { %v1607_v1 = vadd.f32 %v1565_v3, %v3360_v45  ;;  %v1567_v10 = vpop.f32.mrb[18].mxu1  ;;  %1913 = vmatprep.subr.bf16.mxu1 %v1754_v4 }
 0x2e9   : > { %v1608_v46 = vadd.f32 %v1567_v10, %v3358_v9  ;;  %v1569_v28 = vpop.f32.mrb[19].mxu1  ;;  %1914 = vmatpush1.bf16.msra.mxu1 %v1753_v17  ;;  %v1719_v53 = vmul.f32 %v3373_v39, %v1606_v51  ;;  %v1793_v17 = vpop.permute.xlu1 %1792 }
 0x2ea   : > { %v1609_v49 = vadd.f32 %v1569_v28, %v3360_v45  ;;  %v1720_v6 = vmul.f32 %v3378_v59, %v1607_v1  ;;  %v2023_v1 = vld [vmem:[%s3488_s26 + $0x38] sm:$0xff] }
 0x2eb   : > { %v1721_v19 = vmul.f32 %v3373_v39, %v1608_v46 }
 0x2ec   : > { %v1722_v12 = vmul.f32 %v3378_v59, %v1609_v49 }
 0x2ed   : > { %v1755_v30 = vpack.c.bf16 %v1721_v19, %v1719_v53  ;;  %v1798_v19 = vpop.permute.xlu0 %1797 }
 0x2ee   : > { %v1573_v23 = vpop.f32.mrb[20].mxu1  ;;  %v1756_v8 = vpack.c.bf16 %v1722_v12, %v1720_v6  ;;  %v2024_v6 = vld [vmem:[%s3488_s26 + $0x40] sm:$0xff] }
 0x2ef   : > { %v1610_v58 = vadd.f32 %v1573_v23, %v3358_v9  ;;  %v1575_v14 = vpop.f32.mrb[21].mxu1  ;;  %v2025_v23 = vld [vmem:[%s3488_s26 + $0x48] sm:$0xff] }
 0x2f0   : > { %v1611_v33 = vadd.f32 %v1575_v14, %v3360_v45  ;;  %v1577_v44 = vpop.f32.mrb[22].mxu1  ;;  %1915 = vmatprep.subr.bf16.mxu1 %v1756_v8  ;;  %v2026_v14 = vld [vmem:[%s3488_s26 + $0x50] sm:$0xff] }
 0x2f1   : > { %v1612_v57 = vadd.f32 %v1577_v44, %v3358_v9  ;;  %v1579_v42 = vpop.f32.mrb[23].mxu1  ;;  %1916 = vmatpush1.bf16.msra.mxu1 %v1755_v30  ;;  %v1723_v13 = vmul.f32 %v3373_v39, %v1610_v58  ;;  %v2461_v9 = vld [vmem:[%s3572_s4 + $0x8] sm:$0xff]   ;;  %v1803_v58 = vpop.permute.xlu1 %1802 }
 0x2f2   : > { %v1613_v16 = vadd.f32 %v1579_v42, %v3360_v45  ;;  %v1724_v35 = vmul.f32 %v3378_v59, %v1611_v33  ;;  %v2462_v45 = vld [vmem:[%s3572_s4 + $0x10] sm:$0xff]  }
 0x2f3   : > { %v1725_v41 = vmul.f32 %v3373_v39, %v1612_v57  ;;  %v2463_v39 = vld [vmem:[%s3572_s4 + $0x18] sm:$0xff]  }
 0x2f4   : > { %v1726_v36 = vmul.f32 %v3378_v59, %v1613_v16  ;;  %v2464_v59 = vld [vmem:[%s3572_s4 + $0x20] sm:$0xff]   ;;  %v2027_v16 = vld [vmem:[%s3488_s26 + $0x58] sm:$0xff] }
 0x2f5   : > { %v1757_v32 = vpack.c.bf16 %v1725_v41, %v1723_v13 }
 0x2f6   : > { %v1758_v18 = vpack.c.bf16 %v1726_v36, %v1724_v35 }
 0x2f8   : > { %1917 = vmatprep.subr.bf16.mxu1 %v1758_v18  ;;  %v1808_v18 = vpop.permute.xlu0 %1807 }
 0x2f9   : > { %1918 = vmatpush1.bf16.msra.mxu1 %v1757_v32 }
 0x2fc   : > { %1936 = vmatmul.mubr.bf16.vlgmr.msra.gmra.mrb[24].mxu1 %v2460_v5  ;;  %v2028_v5 = vld [vmem:[%s3488_s26 + $0x60] sm:$0xff] }
 0x2fd   : > { %1945 = vmatprep.mubr.bf16.mxu1 %v3780_v55 }
 0x304   : > { %1946 = vmatmul.mubr.bf16.gmra.mrb[28].mxu1 %v2461_v9 }
 0x305   : > { %1955 = vmatprep.mubr.bf16.mxu1 %v3780_v55 }
 0x30c   : > { %1956 = vmatmul.mubr.bf16.gmra.mrb[32].mxu1 %v2462_v45 }
 0x30d   : > { %1965 = vmatprep.mubr.bf16.mxu1 %v3780_v55 }
 0x314   : > { %1966 = vmatmul.mubr.bf16.gmra.mrb[36].mxu1 %v2463_v39  ;;  %v2029_v39 = vld [vmem:[%s3488_s26 + $0x68] sm:$0xff] }
 0x315   : > { %1975 = vmatprep.mubr.bf16.mxu1 %v3780_v55 }
 0x31c   : > { %1976 = vmatmul.mubr.bf16.gmra.mrb[40].mxu1 %v2464_v59 }
 0x31d   : > { %1985 = vmatprep.mubr.bf16.mxu1 %v3780_v55 }
 0x324   : > { %1986 = vmatmul.mubr.bf16.gmra.mrb[44].mxu1 %v2465_v38  ;;  %v1813_v38 = vpop.permute.xlu1 %1812 }
 0x325   : > { %1995 = vmatprep.mubr.bf16.mxu1 %v3780_v55 }
 0x32c   : > { %1996 = vmatmul.mubr.bf16.gmra.mrb[48].mxu1 %v2466_v0  ;;  %v2030_v0 = vld [vmem:[%s3488_s26 + $0x70] sm:$0xff] }
 0x32d   : > { %2005 = vmatprep.mubr.bf16.mxu1 %v3780_v55 }
 0x334   : > { %2006 = vmatmul.mubr.bf16.gmra.mrb[52].mxu1 %v2467_v20 }
 0x3cf   : > { %v1937_v37 = vpop.f32.mrb[24].mxu1 }
 0x3d0   : > { %v1938_v55 = vadd.f32 %v1937_v37, %v1778_v25  ;;  %v1939_v11 = vpop.f32.mrb[25].mxu1 }
 0x3d1   : > { %v1940_v43 = vadd.f32 %v1939_v11, %v1778_v25  ;;  %v1941_v21 = vpop.f32.mrb[26].mxu1 }
 0x3d2   : > { %v2048_v31 = vadd.f32 %v2016_v48, %v1938_v55  ;;  %v1942_v34 = vadd.f32 %v1941_v21, %v1783_v40  ;;  %v1943_v24 = vpop.f32.mrb[27].mxu1 }
 0x3d3   : > { %v2049_v7 = vadd.f32 %v2017_v22, %v1940_v43  ;;  %v1944_v26 = vadd.f32 %v1943_v24, %v1783_v40  ;;  %v2031_v40 = vld [vmem:[%s3488_s26 + $0x78] sm:$0xff] }
 0x3d4   : > { %2080 = vst [vmem:[%s3495_s21] sm:$0xff] %v2048_v31  ;;  %v2050_v52 = vadd.f32 %v2018_v56, %v1942_v34  ;;  %v1818_v56 = vpop.permute.xlu0 %1817  ;;  %v2032_v31 = vld [vmem:[%s3488_s26 + $0x80] sm:$0xff] }
 0x3d5   : > { %2081 = vst [vmem:[%s3495_s21 + $0x8] sm:$0xff] %v2049_v7  ;;  %v2051_v27 = vadd.f32 %v2019_v60, %v1944_v26  ;;  %v2033_v60 = vld [vmem:[%s3488_s26 + $0x88] sm:$0xff]  ;;  %v1823_v26 = vpop.permute.xlu1 %1822 }
 0x3d6   : > { %2082 = vst [vmem:[%s3495_s21 + $0x10] sm:$0xff] %v2050_v52 }
 0x3d7   : > { %2083 = vst [vmem:[%s3495_s21 + $0x18] sm:$0xff] %v2051_v27  ;;  %v1947_v29 = vpop.f32.mrb[28].mxu1 }
 0x3d8   : > { %v1948_v62 = vadd.f32 %v1947_v29, %v1788_v47  ;;  %v1949_v50 = vpop.f32.mrb[29].mxu1 }
 0x3d9   : > { %v1950_v63 = vadd.f32 %v1949_v50, %v1788_v47  ;;  %v1951_v2 = vpop.f32.mrb[30].mxu1  ;;  %v2034_v47 = vld [vmem:[%s3488_s26 + $0x90] sm:$0xff] }
 0x3da   : > { %v2052_v4 = vadd.f32 %v2020_v15, %v1948_v62  ;;  %v1952_v51 = vadd.f32 %v1951_v2, %v1793_v17  ;;  %v1953_v3 = vpop.f32.mrb[31].mxu1  ;;  %v2035_v62 = vld [vmem:[%s3488_s26 + $0x98] sm:$0xff] }
 0x3db   : > { %v2053_v10 = vadd.f32 %v2021_v61, %v1950_v63  ;;  %v1954_v46 = vadd.f32 %v1953_v3, %v1793_v17 }
 0x3dc   : > { %2084 = vst [vmem:[%s3495_s21 + $0x20] sm:$0xff] %v2052_v4  ;;  %v2054_v28 = vadd.f32 %v2022_v54, %v1952_v51  ;;  %v1828_v54 = vpop.permute.xlu0 %1827  ;;  %v2036_v4 = vld [vmem:[%s3488_s26 + $0xa0] sm:$0xff] }
 0x3dd   : > { %2085 = vst [vmem:[%s3495_s21 + $0x28] sm:$0xff] %v2053_v10  ;;  %v2055_v49 = vadd.f32 %v2023_v1, %v1954_v46  ;;  %v2037_v1 = vld [vmem:[%s3488_s26 + $0xa8] sm:$0xff]  ;;  %v1833_v46 = vpop.permute.xlu1 %1832 }
 0x3de   : > { %2086 = vst [vmem:[%s3495_s21 + $0x30] sm:$0xff] %v2054_v28  ;;  %v2038_v28 = vld [vmem:[%s3488_s26 + $0xb0] sm:$0xff] }
 0x3df   : > { %2087 = vst [vmem:[%s3495_s21 + $0x38] sm:$0xff] %v2055_v49  ;;  %v1957_v53 = vpop.f32.mrb[32].mxu1 }
 0x3e0   : > { %v1959_v12 = vpop.f32.mrb[33].mxu1  ;;  %v1958_v30 = vadd.f32 %v1957_v53, %v1798_v19 }
 0x3e1   : > { %v1961_v8 = vpop.f32.mrb[34].mxu1  ;;  %v1960_v33 = vadd.f32 %v1959_v12, %v1798_v19  ;;  %v2039_v12 = vld [vmem:[%s3488_s26 + $0xb8] sm:$0xff] }
 0x3e2   : > { %v1962_v44 = vadd.f32 %v1961_v8, %v1803_v58  ;;  %v2056_v57 = vadd.f32 %v2024_v6, %v1958_v30  ;;  %v1963_v42 = vpop.f32.mrb[35].mxu1 }
 0x3e3   : > { %v2057_v13 = vadd.f32 %v2025_v23, %v1960_v33  ;;  %v1964_v41 = vadd.f32 %v1963_v42, %v1803_v58  ;;  %v1838_v33 = vpop.permute.xlu0 %1837 }
 0x3e4   : > { %v2058_v35 = vadd.f32 %v2026_v14, %v1962_v44  ;;  %2088 = vst [vmem:[%s3495_s21 + $0x40] sm:$0xff] %v2056_v57  ;;  %v2040_v44 = vld [vmem:[%s3488_s26 + $0xc0] sm:$0xff] }
 0x3e5   : > { %2089 = vst [vmem:[%s3495_s21 + $0x48] sm:$0xff] %v2057_v13  ;;  %v2059_v36 = vadd.f32 %v2027_v16, %v1964_v41  ;;  %v2041_v16 = vld [vmem:[%s3488_s26 + $0xc8] sm:$0xff]  ;;  %v1843_v41 = vpop.permute.xlu1 %1842 }
 0x3e6   : > { %2090 = vst [vmem:[%s3495_s21 + $0x50] sm:$0xff] %v2058_v35  ;;  %v2042_v35 = vld [vmem:[%s3488_s26 + $0xd0] sm:$0xff] }
 0x3e7   : > { %2091 = vst [vmem:[%s3495_s21 + $0x58] sm:$0xff] %v2059_v36  ;;  %v1967_v32 = vpop.f32.mrb[36].mxu1 }
 0x3e8   : > { %v1969_v9 = vpop.f32.mrb[37].mxu1  ;;  %v1968_v45 = vadd.f32 %v1967_v32, %v1808_v18 }
 0x3e9   : > { %v1971_v59 = vpop.f32.mrb[38].mxu1  ;;  %v1970_v20 = vadd.f32 %v1969_v9, %v1808_v18  ;;  %v2043_v9 = vld [vmem:[%s3488_s26 + $0xd8] sm:$0xff] }
 0x3ea   : > { %v1972_v25 = vadd.f32 %v1971_v59, %v1813_v38  ;;  %v2060_v37 = vadd.f32 %v2028_v5, %v1968_v45  ;;  %v1973_v48 = vpop.f32.mrb[39].mxu1 }
 0x3eb   : > { %v2061_v55 = vadd.f32 %v2029_v39, %v1970_v20  ;;  %v1974_v11 = vadd.f32 %v1973_v48, %v1813_v38  ;;  %v1848_v20 = vpop.permute.xlu0 %1847 }
 0x3ec   : > { %v2062_v22 = vadd.f32 %v2030_v0, %v1972_v25  ;;  %2092 = vst [vmem:[%s3495_s21 + $0x60] sm:$0xff] %v2060_v37  ;;  %v2044_v25 = vld [vmem:[%s3488_s26 + $0xe0] sm:$0xff] }
 0x3ed   : > { %2093 = vst [vmem:[%s3495_s21 + $0x68] sm:$0xff] %v2061_v55  ;;  %v2063_v43 = vadd.f32 %v2031_v40, %v1974_v11  ;;  %v2045_v40 = vld [vmem:[%s3488_s26 + $0xe8] sm:$0xff]  ;;  %v1853_v11 = vpop.permute.xlu1 %1852 }
 0x3ee   : > { %2094 = vst [vmem:[%s3495_s21 + $0x70] sm:$0xff] %v2062_v22  ;;  %v2046_v22 = vld [vmem:[%s3488_s26 + $0xf0] sm:$0xff] }
 0x3ef   : > { %2095 = vst [vmem:[%s3495_s21 + $0x78] sm:$0xff] %v2063_v43  ;;  %v1977_v21 = vpop.f32.mrb[40].mxu1 }
 0x3f0   : > { %v1979_v34 = vpop.f32.mrb[41].mxu1  ;;  %v1978_v24 = vadd.f32 %v1977_v21, %v1818_v56 }
 0x3f1   : > { %v1981_v7 = vpop.f32.mrb[42].mxu1  ;;  %v1980_v52 = vadd.f32 %v1979_v34, %v1818_v56  ;;  %v2047_v34 = vld [vmem:[%s3488_s26 + $0xf8] sm:$0xff] }
 0x3f2   : > { %v1982_v27 = vadd.f32 %v1981_v7, %v1823_v26  ;;  %v2064_v29 = vadd.f32 %v2032_v31, %v1978_v24  ;;  %v1983_v15 = vpop.f32.mrb[43].mxu1 }
 0x3f3   : > { %v2065_v50 = vadd.f32 %v2033_v60, %v1980_v52  ;;  %v1984_v61 = vadd.f32 %v1983_v15, %v1823_v26 }
 0x3f4   : > { %v2066_v63 = vadd.f32 %v2034_v47, %v1982_v27  ;;  %2096 = vst [vmem:[%s3495_s21 + $0x80] sm:$0xff] %v2064_v29 }
 0x3f5   : > { %2097 = vst [vmem:[%s3495_s21 + $0x88] sm:$0xff] %v2065_v50  ;;  %v2067_v2 = vadd.f32 %v2035_v62, %v1984_v61 }
 0x3f6   : > { %2098 = vst [vmem:[%s3495_s21 + $0x90] sm:$0xff] %v2066_v63 }
 0x3f7   : > { %2099 = vst [vmem:[%s3495_s21 + $0x98] sm:$0xff] %v2067_v2  ;;  %v1987_v17 = vpop.f32.mrb[44].mxu1 }
 0x3f8   : > { %v1989_v51 = vpop.f32.mrb[45].mxu1  ;;  %v1988_v3 = vadd.f32 %v1987_v17, %v1828_v54 }
 0x3f9   : > { %v1991_v10 = vpop.f32.mrb[46].mxu1  ;;  %v1990_v49 = vadd.f32 %v1989_v51, %v1828_v54 }
 0x3fa   : > { %v1992_v53 = vadd.f32 %v1991_v10, %v1833_v46  ;;  %v2068_v19 = vadd.f32 %v2036_v4, %v1988_v3  ;;  %v1993_v6 = vpop.f32.mrb[47].mxu1 }
 0x3fb   : > { %v2069_v30 = vadd.f32 %v2037_v1, %v1990_v49  ;;  %v1994_v23 = vadd.f32 %v1993_v6, %v1833_v46 }
 0x3fc   : > { %v2070_v8 = vadd.f32 %v2038_v28, %v1992_v53  ;;  %2100 = vst [vmem:[%s3495_s21 + $0xa0] sm:$0xff] %v2068_v19 }
 0x3fd   : > { %2101 = vst [vmem:[%s3495_s21 + $0xa8] sm:$0xff] %v2069_v30  ;;  %v2071_v58 = vadd.f32 %v2039_v12, %v1994_v23 }
 0x3fe   : > { %2102 = vst [vmem:[%s3495_s21 + $0xb0] sm:$0xff] %v2070_v8 }
 0x3ff   : > { %2103 = vst [vmem:[%s3495_s21 + $0xb8] sm:$0xff] %v2071_v58  ;;  %v1997_v14 = vpop.f32.mrb[48].mxu1 }
 0x400   : > { %v1999_v57 = vpop.f32.mrb[49].mxu1  ;;  %v1998_v42 = vadd.f32 %v1997_v14, %v1838_v33 }
 0x401   : > { %v2001_v13 = vpop.f32.mrb[50].mxu1  ;;  %v2000_v36 = vadd.f32 %v1999_v57, %v1838_v33 }
 0x402   : > { %v2002_v32 = vadd.f32 %v2001_v13, %v1843_v41  ;;  %v2072_v18 = vadd.f32 %v2040_v44, %v1998_v42  ;;  %v2003_v5 = vpop.f32.mrb[51].mxu1 }
 0x403   : > { %v2073_v45 = vadd.f32 %v2041_v16, %v2000_v36  ;;  %v2004_v39 = vadd.f32 %v2003_v5, %v1843_v41 }
 0x404   : > { %v2074_v59 = vadd.f32 %v2042_v35, %v2002_v32  ;;  %2104 = vst [vmem:[%s3495_s21 + $0xc0] sm:$0xff] %v2072_v18 }
 0x405   : > { %2105 = vst [vmem:[%s3495_s21 + $0xc8] sm:$0xff] %v2073_v45  ;;  %v2075_v38 = vadd.f32 %v2043_v9, %v2004_v39 }
 0x406   : > { %2106 = vst [vmem:[%s3495_s21 + $0xd0] sm:$0xff] %v2074_v59 }
 0x407   : > { %2107 = vst [vmem:[%s3495_s21 + $0xd8] sm:$0xff] %v2075_v38  ;;  %v2007_v0 = vpop.f32.mrb[52].mxu1 }
 0x408   : > { %v2009_v37 = vpop.f32.mrb[53].mxu1  ;;  %v2008_v48 = vadd.f32 %v2007_v0, %v1848_v20 }
 0x409   : > { %v2011_v55 = vpop.f32.mrb[54].mxu1  ;;  %v2010_v43 = vadd.f32 %v2009_v37, %v1848_v20 }
 0x40a   : > { %v2012_v21 = vadd.f32 %v2011_v55, %v1853_v11  ;;  %v2076_v56 = vadd.f32 %v2044_v25, %v2008_v48  ;;  %v2013_v31 = vpop.f32.mrb[55].mxu1 }
 0x40b   : > { %v2077_v24 = vadd.f32 %v2045_v40, %v2010_v43  ;;  %v2014_v60 = vadd.f32 %v2013_v31, %v1853_v11 }
 0x40c   : > { %v2078_v7 = vadd.f32 %v2046_v22, %v2012_v21  ;;  %2108 = vst [vmem:[%s3495_s21 + $0xe0] sm:$0xff] %v2076_v56 }
 0x40d   : > { %2109 = vst [vmem:[%s3495_s21 + $0xe8] sm:$0xff] %v2077_v24  ;;  %v2079_v26 = vadd.f32 %v2047_v34, %v2014_v60 }
 0x40e   : > { %2110 = vst [vmem:[%s3495_s21 + $0xf0] sm:$0xff] %v2078_v7 }
 0x40f   : > { %2111 = vst [vmem:[%s3495_s21 + $0xf8] sm:$0xff] %v2079_v26 }
 0x410 PF: > { %s16_s23 = sadd.s32 1, %s2622_s23   ;;  %s3783_s21 = smov %s2618_s22 }
 0x411   : > { %p13_p5 = scmp.ge.s32.totalorder %s16_s23, 4   ;;  %s3784_s22 = smov %s3786_s24 }
 0x413   :  { %15 = sbr.rel (!%p13_p5) target bundleno = 2 (0x2), region = 91 }

</bundles_post_ra>
